<compile_context>
chip_gen: v7x
topology: tpu7x:2x2x1
jax: 0.10.0
libtpu: 0.0.40
codegen_flags: <defaults>
</compile_context>

<pallas_src>
import jax
import jax.numpy as jnp
from jax.experimental import pallas as pl
from jax.experimental.pallas import tpu as pltpu

H1, H2, NUM_CLASSES = 1000, 400, 11
H1_PAD, H2_PAD, OUT_PAD = 1024, 512, 128        # lane-multiple padded dims
BN_EPS = 1e-5
NEG_BIG = -1e9                                  # masks padded class logits


# ---------------------------------------------------------------------------
# math helpers (pure jnp -> shared by kernel and reference)
# ---------------------------------------------------------------------------
def _bn_train(h, gamma, beta):
    """Training-mode BatchNorm1d (biased variance), stable two-pass, fused scale/shift."""
    inv_b = jnp.float32(1.0 / h.shape[0])
    mean = jnp.sum(h, axis=0, keepdims=True) * inv_b
    centered = h - mean
    var = jnp.sum(centered * centered, axis=0, keepdims=True) * inv_b
    scale = gamma * jax.lax.rsqrt(var + BN_EPS)
    return centered * scale + beta


# ---------------------------------------------------------------------------
# kernel
# ---------------------------------------------------------------------------
def food11k_kernel(x_ref,
                   w1_ref, g1_ref, be1_ref,
                   w2_ref, g2_ref, be2_ref,
                   w3_ref, b3_ref,
                   out_ref, h1_acc):
    k = pl.program_id(0)

    @pl.when(k == 0)
    def _():
        h1_acc[...] = jnp.zeros_like(h1_acc)

    # layer 0 (ReLU, already bf16) + layer-1 partial matmul over this K tile.
    # bf16 on the MXU, f32 accumulation in VMEM scratch.
    x = jnp.maximum(x_ref[...], 0.0)
    h1_acc[...] += jnp.dot(x, w1_ref[...], preferred_element_type=jnp.float32)

    @pl.when(k == pl.num_programs(0) - 1)
    def _():
        # ---- Linear(F,1000) epilogue + BN + ReLU (bias absorbed by BN mean) -
        h1 = _bn_train(h1_acc[...], g1_ref[...], be1_ref[...])
        h1 = jnp.maximum(h1, 0.0).astype(jnp.bfloat16)

        # ---- Linear(1000,400) + BN + ReLU (bias absorbed by BN mean) --------
        h2 = jnp.dot(h1, w2_ref[...], preferred_element_type=jnp.float32)
        h2 = _bn_train(h2, g2_ref[...], be2_ref[...])
        h2 = jnp.maximum(h2, 0.0).astype(jnp.bfloat16)

        # ---- Linear(400,11) + Softmax (padding mask baked into b3) ----------
        logits = jnp.dot(h2, w3_ref[...], preferred_element_type=jnp.float32) + b3_ref[...]
        mx = jnp.max(logits, axis=1, keepdims=True)
        e = jnp.exp(logits - mx)
        denom = jnp.sum(e, axis=1, keepdims=True)
        out_ref[...] = e / denom            # exact normalization (rows sum to 1)


# ---------------------------------------------------------------------------
# wrapper
# ---------------------------------------------------------------------------
def _tpu_vmem_capacity_bytes():
    """Physical VMEM capacity; conservative v7x default if unqueryable (e.g. interpret)."""
    try:
        return int(pltpu.get_tpu_info().vmem_capacity_bytes)
    except Exception:
        return 64 << 20


def choose_tiling(ft_concat_size):
    cap = _tpu_vmem_capacity_bytes()
    tk_max = 8192 if cap >= (100 << 20) else 4096   # v5e/v6e (128 MiB) vs v7x (64 MiB)
    f128 = ((ft_concat_size + 127) // 128) * 128
    tk = min(f128, tk_max)
    f_pad = ((f128 + tk - 1) // tk) * tk
    return tk, f_pad


def _pad2(a, rows, cols):
    r, c = a.shape
    return jnp.pad(a, ((0, rows - r), (0, cols - c)))


def prepare_params(params, f_pad):
    """Pad params to lane-multiple shapes; bf16 weight matrices; mask baked into b3."""
    b3 = _pad2(params["b3"], 1, OUT_PAD)
    pad_mask = (jnp.arange(OUT_PAD) >= NUM_CLASSES)[None, :]
    b3 = jnp.where(pad_mask, jnp.float32(NEG_BIG), b3)
    return dict(
        w1=_pad2(params["w1"], f_pad, H1_PAD).astype(jnp.bfloat16),
        g1=_pad2(params["g1"], 1, H1_PAD),
        be1=_pad2(params["be1"], 1, H1_PAD),
        w2=_pad2(params["w2"], H1_PAD, H2_PAD).astype(jnp.bfloat16),
        g2=_pad2(params["g2"], 1, H2_PAD),
        be2=_pad2(params["be2"], 1, H2_PAD),
        w3=_pad2(params["w3"], H2_PAD, OUT_PAD).astype(jnp.bfloat16),
        b3=b3,
    )


def food11k_forward(x_pad, p, tk):
    """x_pad: (B, F_pad) float32, zero-padded features.  p: prepared params."""
    B, f_pad = x_pad.shape
    num_k = f_pad // tk
    x_bf16 = x_pad.astype(jnp.bfloat16)          # halve the x DMA stream

    in_specs = [
        pl.BlockSpec((B, tk), lambda k: (0, k)),             # x (K-tiled, bf16)
        pl.BlockSpec((tk, H1_PAD), lambda k: (k, 0)),        # w1 (streamed bf16)
        pl.BlockSpec((1, H1_PAD), lambda k: (0, 0)),         # gamma1
        pl.BlockSpec((1, H1_PAD), lambda k: (0, 0)),         # beta1
        pl.BlockSpec((H1_PAD, H2_PAD), lambda k: (0, 0)),    # w2 (bf16)
        pl.BlockSpec((1, H2_PAD), lambda k: (0, 0)),         # gamma2
        pl.BlockSpec((1, H2_PAD), lambda k: (0, 0)),         # beta2
        pl.BlockSpec((H2_PAD, OUT_PAD), lambda k: (0, 0)),   # w3 (bf16)
        pl.BlockSpec((1, OUT_PAD), lambda k: (0, 0)),        # b3 (mask baked in)
    ]
    out_spec = pl.BlockSpec((B, OUT_PAD), lambda k: (0, 0))

    # Real VMEM footprint + headroom, clamped to 75% of this chip's physical VMEM.
    vmem_bytes = (
        2 * (B * tk * 2 + tk * H1_PAD * 2)                  # double-buffered x / w1 (bf16)
        + 2 * (H1_PAD * H2_PAD + H2_PAD * OUT_PAD) * 2      # resident w2 / w3 (bf16)
        + 2 * (2 * H1_PAD + 2 * H2_PAD + OUT_PAD) * 4       # gamma/beta/b3 vectors
        + B * H1_PAD * 4                                    # h1 accumulator scratch
        + 2 * B * OUT_PAD * 4                               # output block
    )
    cap = _tpu_vmem_capacity_bytes()
    vmem_limit = max(16 << 20, min(vmem_bytes + (8 << 20), (cap * 3) // 4))

    out = pl.pallas_call(
        food11k_kernel,
        out_shape=jax.ShapeDtypeStruct((B, OUT_PAD), jnp.float32),
        grid=(num_k,),
        in_specs=in_specs,
        out_specs=out_spec,
        scratch_shapes=[pltpu.VMEM((B, H1_PAD), jnp.float32)],
        compiler_params=pltpu.CompilerParams(
            dimension_semantics=("arbitrary",),
            vmem_limit_bytes=int(vmem_limit),
        ),
    )(x_bf16, p["w1"], p["g1"], p["be1"],
      p["w2"], p["g2"], p["be2"], p["w3"], p["b3"])

    return out[:, :NUM_CLASSES]


# ---------------------------------------------------------------------------
# params + reference
# ---------------------------------------------------------------------------
def init_params(key, ft_concat_size):
    """Deterministic synthetic parameters matching the PyTorch module's shapes."""
    ks = jax.random.split(key, 6)

    def linear(kw, kb, fan_in, fan_out):
        bound = 1.0 / jnp.sqrt(jnp.float32(fan_in))
        w = jax.random.uniform(kw, (fan_in, fan_out), jnp.float32, -bound, bound)
        b = jax.random.uniform(kb, (1, fan_out), jnp.float32, -bound, bound)
        return w, b

    w1, b1 = linear(ks[0], ks[1], ft_concat_size, H1)
    w2, b2 = linear(ks[2], ks[3], H1, H2)
    w3, b3 = linear(ks[4], ks[5], H2, NUM_CLASSES)
    return {
        "w1": w1, "b1": b1,
        "g1": jnp.ones((1, H1), jnp.float32), "be1": jnp.zeros((1, H1), jnp.float32),
        "w2": w2, "b2": b2,
        "g2": jnp.ones((1, H2), jnp.float32), "be2": jnp.zeros((1, H2), jnp.float32),
        "w3": w3, "b3": b3,
    }


def reference_forward(x, p):
    """Pure-JAX reference mirroring the kernel's bf16 weight/activation rounding.
    Keeps b1/b2 (kernel drops them; training-mode BN cancels them exactly)."""
    def bf(a):
        return a.astype(jnp.bfloat16).astype(jnp.float32)

    h = bf(jnp.maximum(x, 0.0))
    h = h @ bf(p["w1"]) + p["b1"]
    h = _bn_train(h, p["g1"], p["be1"])
    h = bf(jnp.maximum(h, 0.0))
    h = h @ bf(p["w2"]) + p["b2"]
    h = _bn_train(h, p["g2"], p["be2"])
    h = bf(jnp.maximum(h, 0.0))
    logits = h @ bf(p["w3"]) + p["b3"]
    return jax.nn.softmax(logits, axis=1)


# ---------------------------------------------------------------------------
if __name__ == "__main__":
    B = 8
    FT_CONCAT_SIZE = 256

    key = jax.random.PRNGKey(0)
    k_x, k_p = jax.random.split(key)
    x = jax.random.normal(k_x, (B, FT_CONCAT_SIZE), jnp.float32)
    params = init_params(k_p, FT_CONCAT_SIZE)

    tk, f_pad = choose_tiling(FT_CONCAT_SIZE)
    x_pad = jnp.pad(x, ((0, 0), (0, f_pad - FT_CONCAT_SIZE)))
    prepared = prepare_params(params, f_pad)

    out = food11k_forward(x_pad, prepared, tk)
    out = jax.block_until_ready(out)

    ref = reference_forward(x, params)
    assert out.shape == (B, NUM_CLASSES)
    assert bool(jnp.all(jnp.isfinite(out)))
    assert jnp.allclose(jnp.sum(out, axis=1), 1.0, atol=1e-3)
    assert jnp.allclose(out, ref, atol=2e-3, rtol=2e-3)

    print("KERNEL_OK")
</pallas_src>

<mosaic_0001>
module attributes {stable_mosaic.version = 11 : i64} {
  func.func @food11k_kernel(%arg0: i32, %arg1: memref<8x256xbf16, #tpu.memory_space<vmem>>, %arg2: memref<256x1024xbf16, #tpu.memory_space<vmem>>, %arg3: memref<1x1024xf32, #tpu.memory_space<vmem>>, %arg4: memref<1x1024xf32, #tpu.memory_space<vmem>>, %arg5: memref<1024x512xbf16, #tpu.memory_space<vmem>>, %arg6: memref<1x512xf32, #tpu.memory_space<vmem>>, %arg7: memref<1x512xf32, #tpu.memory_space<vmem>>, %arg8: memref<512x128xbf16, #tpu.memory_space<vmem>>, %arg9: memref<1x128xf32, #tpu.memory_space<vmem>>, %arg10: memref<8x128xf32, #tpu.memory_space<vmem>>, %arg11: memref<8x1024xf32, #tpu.memory_space<vmem>>) attributes {dimension_semantics = [#tpu.dimension_semantics<arbitrary>], iteration_bounds = array<i64: 1>, scalar_prefetch = 0 : i64, scratch_operands = 1 : i64, tpu.core_type = #tpu.core_type<tc>, window_params = [{transform_indices = @transform_0, window_bounds = array<i64: 8, 256>}, {transform_indices = @transform_1, window_bounds = array<i64: 256, 1024>}, {pipeline_mode = #tpu.pipeline_mode<synchronous>, transform_indices = @transform_2, window_bounds = array<i64: 1, 1024>}, {pipeline_mode = #tpu.pipeline_mode<synchronous>, transform_indices = @transform_3, window_bounds = array<i64: 1, 1024>}, {pipeline_mode = #tpu.pipeline_mode<synchronous>, transform_indices = @transform_4, window_bounds = array<i64: 1024, 512>}, {pipeline_mode = #tpu.pipeline_mode<synchronous>, transform_indices = @transform_5, window_bounds = array<i64: 1, 512>}, {pipeline_mode = #tpu.pipeline_mode<synchronous>, transform_indices = @transform_6, window_bounds = array<i64: 1, 512>}, {pipeline_mode = #tpu.pipeline_mode<synchronous>, transform_indices = @transform_7, window_bounds = array<i64: 512, 128>}, {pipeline_mode = #tpu.pipeline_mode<synchronous>, transform_indices = @transform_8, window_bounds = array<i64: 1, 128>}, {pipeline_mode = #tpu.pipeline_mode<synchronous>, transform_indices = @transform_9, window_bounds = array<i64: 8, 128>}]} {
    %c0_i32 = arith.constant 0 : i32
    %0 = arith.cmpi eq, %arg0, %c0_i32 : i32
    %1 = arith.extui %0 : i1 to i32
    %c0_i32_0 = arith.constant 0 : i32
    %2 = arith.cmpi ne, %1, %c0_i32_0 : i32
    scf.if %2 {
      %cst_11 = arith.constant 0.000000e+00 : f32
      %14 = vector.broadcast %cst_11 : f32 to vector<8x1024xf32>
      %c0_12 = arith.constant 0 : index
      %c0_13 = arith.constant 0 : index
      %15 = vector.load %arg11[%c0_12, %c0_13] : memref<8x1024xf32, #tpu.memory_space<vmem>>, vector<8x1024xf32>
      tpu.vector_store %arg11[%c0_12, %c0_13], %14 {strides = array<i32>} : memref<8x1024xf32, #tpu.memory_space<vmem>>, vector<8x1024xf32>,
    } else {
    }
    %c0 = arith.constant 0 : index
    %c0_1 = arith.constant 0 : index
    %3 = vector.load %arg1[%c0, %c0_1] : memref<8x256xbf16, #tpu.memory_space<vmem>>, vector<8x256xbf16>
    %cst = arith.constant 0.000000e+00 : bf16
    %4 = vector.broadcast %cst : bf16 to vector<8x256xbf16>
    %5 = arith.maximumf %3, %4 : vector<8x256xbf16>
    %c0_2 = arith.constant 0 : index
    %c0_3 = arith.constant 0 : index
    %6 = vector.load %arg11[%c0_2, %c0_3] : memref<8x1024xf32, #tpu.memory_space<vmem>>, vector<8x1024xf32>
    %c0_4 = arith.constant 0 : index
    %c0_5 = arith.constant 0 : index
    %7 = vector.load %arg2[%c0_4, %c0_5] : memref<256x1024xbf16, #tpu.memory_space<vmem>>, vector<256x1024xbf16>
    %cst_6 = arith.constant dense<0.000000e+00> : vector<8x1024xf32>
    %8 = tpu.matmul %5, %7, %cst_6 {dimension_numbers = #tpu.dot_dimension_numbers<[1], [0], [0], [1], [0, 0, 1, 1], [], []>} : vector<8x256xbf16>, vector<256x1024xbf16>, vector<8x1024xf32> -> vector<8x1024xf32>
    %9 = arith.addf %6, %8 : vector<8x1024xf32>
    %c0_7 = arith.constant 0 : index
    %c0_8 = arith.constant 0 : index
    %10 = vector.load %arg11[%c0_7, %c0_8] : memref<8x1024xf32, #tpu.memory_space<vmem>>, vector<8x1024xf32>
    tpu.vector_store %arg11[%c0_7, %c0_8], %9 {strides = array<i32>} : memref<8x1024xf32, #tpu.memory_space<vmem>>, vector<8x1024xf32>,
    %c0_i32_9 = arith.constant 0 : i32
    %11 = arith.cmpi eq, %arg0, %c0_i32_9 : i32
    %12 = arith.extui %11 : i1 to i32
    %c0_i32_10 = arith.constant 0 : i32
    %13 = arith.cmpi ne, %12, %c0_i32_10 : i32
    scf.if %13 {
      %c0_11 = arith.constant 0 : index
      %c0_12 = arith.constant 0 : index
      %14 = vector.load %arg11[%c0_11, %c0_12] : memref<8x1024xf32, #tpu.memory_space<vmem>>, vector<8x1024xf32>
      %c0_13 = arith.constant 0 : index
      %c0_14 = arith.constant 0 : index
      %15 = vector.load %arg3[%c0_13, %c0_14] : memref<1x1024xf32, #tpu.memory_space<vmem>>, vector<1x1024xf32>
      %c0_15 = arith.constant 0 : index
      %c0_16 = arith.constant 0 : index
      %16 = vector.load %arg4[%c0_15, %c0_16] : memref<1x1024xf32, #tpu.memory_space<vmem>>, vector<1x1024xf32>
      %cst_17 = arith.constant dense<0.000000e+00> : vector<1024xf32>
      %17 = vector.multi_reduction <add>, %14, %cst_17 [0] : vector<8x1024xf32> to vector<1024xf32>
      %18 = vector.shape_cast %17 : vector<1024xf32> to vector<1x1024xf32>
      %cst_18 = arith.constant 1.250000e-01 : f32
      %19 = vector.broadcast %cst_18 : f32 to vector<1x1024xf32>
      %20 = arith.mulf %18, %19 : vector<1x1024xf32>
      %21 = vector.broadcast %20 : vector<1x1024xf32> to vector<8x1024xf32>
      %22 = arith.subf %14, %21 : vector<8x1024xf32>
      %23 = arith.mulf %22, %22 : vector<8x1024xf32>
      %cst_19 = arith.constant dense<0.000000e+00> : vector<1024xf32>
      %24 = vector.multi_reduction <add>, %23, %cst_19 [0] : vector<8x1024xf32> to vector<1024xf32>
      %25 = vector.shape_cast %24 : vector<1024xf32> to vector<1x1024xf32>
      %cst_20 = arith.constant 1.250000e-01 : f32
      %26 = vector.broadcast %cst_20 : f32 to vector<1x1024xf32>
      %27 = arith.mulf %25, %26 : vector<1x1024xf32>
      %cst_21 = arith.constant 9.99999974E-6 : f32
      %28 = vector.broadcast %cst_21 : f32 to vector<1x1024xf32>
      %29 = arith.addf %27, %28 : vector<1x1024xf32>
      %30 = math.rsqrt %29 : vector<1x1024xf32>
      %31 = arith.mulf %15, %30 : vector<1x1024xf32>
      %32 = vector.broadcast %31 : vector<1x1024xf32> to vector<8x1024xf32>
      %33 = arith.mulf %22, %32 : vector<8x1024xf32>
      %34 = vector.broadcast %16 : vector<1x1024xf32> to vector<8x1024xf32>
      %35 = arith.addf %33, %34 : vector<8x1024xf32>
      %cst_22 = arith.constant 0.000000e+00 : f32
      %36 = vector.broadcast %cst_22 : f32 to vector<8x1024xf32>
      %37 = arith.maximumf %35, %36 : vector<8x1024xf32>
      %38 = arith.truncf %37 : vector<8x1024xf32> to vector<8x1024xbf16>
      %c0_23 = arith.constant 0 : index
      %c0_24 = arith.constant 0 : index
      %39 = vector.load %arg5[%c0_23, %c0_24] : memref<1024x512xbf16, #tpu.memory_space<vmem>>, vector<1024x512xbf16>
      %cst_25 = arith.constant dense<0.000000e+00> : vector<8x512xf32>
      %40 = tpu.matmul %38, %39, %cst_25 {dimension_numbers = #tpu.dot_dimension_numbers<[1], [0], [0], [1], [0, 0, 1, 1], [], []>} : vector<8x1024xbf16>, vector<1024x512xbf16>, vector<8x512xf32> -> vector<8x512xf32>
      %c0_26 = arith.constant 0 : index
      %c0_27 = arith.constant 0 : index
      %41 = vector.load %arg6[%c0_26, %c0_27] : memref<1x512xf32, #tpu.memory_space<vmem>>, vector<1x512xf32>
      %c0_28 = arith.constant 0 : index
      %c0_29 = arith.constant 0 : index
      %42 = vector.load %arg7[%c0_28, %c0_29] : memref<1x512xf32, #tpu.memory_space<vmem>>, vector<1x512xf32>
      %cst_30 = arith.constant dense<0.000000e+00> : vector<512xf32>
      %43 = vector.multi_reduction <add>, %40, %cst_30 [0] : vector<8x512xf32> to vector<512xf32>
      %44 = vector.shape_cast %43 : vector<512xf32> to vector<1x512xf32>
      %cst_31 = arith.constant 1.250000e-01 : f32
      %45 = vector.broadcast %cst_31 : f32 to vector<1x512xf32>
      %46 = arith.mulf %44, %45 : vector<1x512xf32>
      %47 = vector.broadcast %46 : vector<1x512xf32> to vector<8x512xf32>
      %48 = arith.subf %40, %47 : vector<8x512xf32>
      %49 = arith.mulf %48, %48 : vector<8x512xf32>
      %cst_32 = arith.constant dense<0.000000e+00> : vector<512xf32>
      %50 = vector.multi_reduction <add>, %49, %cst_32 [0] : vector<8x512xf32> to vector<512xf32>
      %51 = vector.shape_cast %50 : vector<512xf32> to vector<1x512xf32>
      %cst_33 = arith.constant 1.250000e-01 : f32
      %52 = vector.broadcast %cst_33 : f32 to vector<1x512xf32>
      %53 = arith.mulf %51, %52 : vector<1x512xf32>
      %cst_34 = arith.constant 9.99999974E-6 : f32
      %54 = vector.broadcast %cst_34 : f32 to vector<1x512xf32>
      %55 = arith.addf %53, %54 : vector<1x512xf32>
      %56 = math.rsqrt %55 : vector<1x512xf32>
      %57 = arith.mulf %41, %56 : vector<1x512xf32>
      %58 = vector.broadcast %57 : vector<1x512xf32> to vector<8x512xf32>
      %59 = arith.mulf %48, %58 : vector<8x512xf32>
      %60 = vector.broadcast %42 : vector<1x512xf32> to vector<8x512xf32>
      %61 = arith.addf %59, %60 : vector<8x512xf32>
      %cst_35 = arith.constant 0.000000e+00 : f32
      %62 = vector.broadcast %cst_35 : f32 to vector<8x512xf32>
      %63 = arith.maximumf %61, %62 : vector<8x512xf32>
      %64 = arith.truncf %63 : vector<8x512xf32> to vector<8x512xbf16>
      %c0_36 = arith.constant 0 : index
      %c0_37 = arith.constant 0 : index
      %65 = vector.load %arg8[%c0_36, %c0_37] : memref<512x128xbf16, #tpu.memory_space<vmem>>, vector<512x128xbf16>
      %cst_38 = arith.constant dense<0.000000e+00> : vector<8x128xf32>
      %66 = tpu.matmul %64, %65, %cst_38 {dimension_numbers = #tpu.dot_dimension_numbers<[1], [0], [0], [1], [0, 0, 1, 1], [], []>} : vector<8x512xbf16>, vector<512x128xbf16>, vector<8x128xf32> -> vector<8x128xf32>
      %c0_39 = arith.constant 0 : index
      %c0_40 = arith.constant 0 : index
      %67 = vector.load %arg9[%c0_39, %c0_40] : memref<1x128xf32, #tpu.memory_space<vmem>>, vector<1x128xf32>
      %68 = vector.broadcast %67 : vector<1x128xf32> to vector<8x128xf32>
      %69 = arith.addf %66, %68 : vector<8x128xf32>
      %cst_41 = arith.constant dense<0xFF800000> : vector<8xf32>
      %70 = vector.multi_reduction <maximumf>, %69, %cst_41 [1] : vector<8x128xf32> to vector<8xf32>
      %71 = vector.shape_cast %70 : vector<8xf32> to vector<8x1xf32>
      %72 = vector.broadcast %71 : vector<8x1xf32> to vector<8x128xf32>
      %73 = arith.subf %69, %72 : vector<8x128xf32>
      %74 = math.exp %73 : vector<8x128xf32>
      %cst_42 = arith.constant dense<0.000000e+00> : vector<8xf32>
      %75 = vector.multi_reduction <add>, %74, %cst_42 [1] : vector<8x128xf32> to vector<8xf32>
      %76 = vector.shape_cast %75 : vector<8xf32> to vector<8x1xf32>
      %77 = vector.broadcast %76 : vector<8x1xf32> to vector<8x128xf32>
      %78 = arith.divf %74, %77 : vector<8x128xf32>
      %c0_43 = arith.constant 0 : index
      %c0_44 = arith.constant 0 : index
      %79 = vector.load %arg10[%c0_43, %c0_44] : memref<8x128xf32, #tpu.memory_space<vmem>>, vector<8x128xf32>
      tpu.vector_store %arg10[%c0_43, %c0_44], %78 {strides = array<i32>} : memref<8x128xf32, #tpu.memory_space<vmem>>, vector<8x128xf32>,
    } else {
    }
    return
  }
  func.func @transform_0(%arg0: i32) -> (i32, i32) {
    %c0_i32 = arith.constant 0 : i32
    %c0_i32_0 = arith.constant 0 : i32
    return %c0_i32, %arg0 : i32, i32
  }
  func.func @transform_1(%arg0: i32) -> (i32, i32) {
    %c0_i32 = arith.constant 0 : i32
    %c0_i32_0 = arith.constant 0 : i32
    return %arg0, %c0_i32 : i32, i32
  }
  func.func @transform_2(%arg0: i32) -> (i32, i32) {
    %c0_i32 = arith.constant 0 : i32
    %c0_i32_0 = arith.constant 0 : i32
    %c0_i32_1 = arith.constant 0 : i32
    return %c0_i32, %c0_i32_0 : i32, i32
  }
  func.func @transform_3(%arg0: i32) -> (i32, i32) {
    %c0_i32 = arith.constant 0 : i32
    %c0_i32_0 = arith.constant 0 : i32
    %c0_i32_1 = arith.constant 0 : i32
    return %c0_i32, %c0_i32_0 : i32, i32
  }
  func.func @transform_4(%arg0: i32) -> (i32, i32) {
    %c0_i32 = arith.constant 0 : i32
    %c0_i32_0 = arith.constant 0 : i32
    %c0_i32_1 = arith.constant 0 : i32
    return %c0_i32, %c0_i32_0 : i32, i32
  }
  func.func @transform_5(%arg0: i32) -> (i32, i32) {
    %c0_i32 = arith.constant 0 : i32
    %c0_i32_0 = arith.constant 0 : i32
    %c0_i32_1 = arith.constant 0 : i32
    return %c0_i32, %c0_i32_0 : i32, i32
  }
  func.func @transform_6(%arg0: i32) -> (i32, i32) {
    %c0_i32 = arith.constant 0 : i32
    %c0_i32_0 = arith.constant 0 : i32
    %c0_i32_1 = arith.constant 0 : i32
    return %c0_i32, %c0_i32_0 : i32, i32
  }
  func.func @transform_7(%arg0: i32) -> (i32, i32) {
    %c0_i32 = arith.constant 0 : i32
    %c0_i32_0 = arith.constant 0 : i32
    %c0_i32_1 = arith.constant 0 : i32
    return %c0_i32, %c0_i32_0 : i32, i32
  }
  func.func @transform_8(%arg0: i32) -> (i32, i32) {
    %c0_i32 = arith.constant 0 : i32
    %c0_i32_0 = arith.constant 0 : i32
    %c0_i32_1 = arith.constant 0 : i32
    return %c0_i32, %c0_i32_0 : i32, i32
  }
  func.func @transform_9(%arg0: i32) -> (i32, i32) {
    %c0_i32 = arith.constant 0 : i32
    %c0_i32_0 = arith.constant 0 : i32
    %c0_i32_1 = arith.constant 0 : i32
    return %c0_i32, %c0_i32_0 : i32, i32
  }
}

</mosaic_0001>

<bundles_post_ra>
// kernel: tpu_custom_call.1
= control target key start
LH: loop header
LB: loop body
LE: loop exit
PB: predicated region body
PF: predicated region fallthrough
CT: control target
= control target key end

     0   :  { %14 = vsyncpa [#allocation4], 0  ;;  %s5177_s0 = inlined_call_operand.hbm [shape: bf16[8,256], index: 0, kind: input, shape index: {}]   ;;  %s5178_s1 = inlined_call_operand.hbm [shape: bf16[256,1024], index: 1, kind: input, shape index: {}]   ;;  %s5179_s2 = inlined_call_operand.hbm [shape: f32[1,1024], index: 2, kind: input, shape index: {}]   ;;  %s5180_s3 = inlined_call_operand.vmem [shape: f32[1,1024], index: 3, kind: input, shape index: {}]   ;;  %s5181_s4 = inlined_call_operand.hbm [shape: bf16[1024,512], index: 4, kind: input, shape index: {}]   ;;  %s5182_s5 = inlined_call_operand.vmem [shape: f32[1,512], index: 5, kind: input, shape index: {}]   ;;  %s5183_s6 = inlined_call_operand.vmem [shape: f32[1,512], index: 6, kind: input, shape index: {}]   ;;  %s5184_s7 = inlined_call_operand.hbm [shape: bf16[512,128], index: 7, kind: input, shape index: {}]   ;;  %s5185_s8 = inlined_call_operand.vmem [shape: f32[1,128], index: 8, kind: input, shape index: {}]   ;;  %s5186_s9 = inlined_call_operand.hbm [shape: f32[8,128], index: 9, kind: output, shape index: {}]  }
   0x1   :  { %15 = vsyncpa [#allocation7], 0 }
   0x2   :  { %16 = vsyncpa [#allocation10], 0 }
   0x3   :  { %17 = vsyncpa [#allocation5], 0  ;;  %s4886_s30 = smov [#allocation6]   ;;  %s4746_s13 = scalar_lea.hbm %s5178_s1, 16384 }
   0x4   :  { %s33_s10 = sshll.u32 %s4886_s30, 4  ;;  %p4747_p0 = scmp.ne.s32.totalorder %s5178_s1, %s4746_s13  ;;  %s34_s10 = int_to_ptr.vmem [resolvable:$true] %s33_s10 }
   0x5   :  { %p4750_p1 = scmp.lt.u32.totalorder %s4746_s13, %s5178_s1 }
   0x7   :  { %p4752_p2 = pnand %p4750_p1, %p4747_p0 }
   0x9   :  { %4755 = shalt.err (!%p4752_p2)
}
   0xa   :  { %s4756_s18 = scalar_lea.vmem %s34_s10, 16384  ;;  %p4761_p4 = scmp.lt.s32.totalorder %s34_s10, %s34_s10 }
   0xb   :  { %p4757_p3 = scmp.ne.s32.totalorder %s34_s10, %s4756_s18  ;;  %p4762_p5 = scmp.lt.s32.totalorder %s4756_s18, %s4756_s18 }
   0xd   :  { %p4763_p6 = por %p4762_p5, %p4761_p4 }
   0xf   :  { %p4764_p7 = pnand %p4763_p6, %p4757_p3 }
  0x11   :  { %4767 = shalt.err (!%p4764_p7)
}
  0x12   :  { %s4887_s19 = smov 512   ;;  %s4888_s20 = smov 32  }
  0x13   :  { %39 = dma.hbm_to_vmem [thread:$0]  %s5178_s1, 16384, %s34_s10, [#allocation7], %s4887_s19, %s4887_s19, %s4888_s20  }
  0x14   :  { %s4889_s23 = smov [#allocation9]   ;;  %s4768_s27 = scalar_lea.hbm %s5181_s4, 32768 }
  0x15   :  { %s57_s24 = sshll.u32 %s4889_s23, 4  ;;  %p4769_p8 = scmp.ne.s32.totalorder %s5181_s4, %s4768_s27  ;;  %s58_s24 = int_to_ptr.vmem [resolvable:$true] %s57_s24 }
  0x16   :  { %p4772_p9 = scmp.lt.u32.totalorder %s4768_s27, %s5181_s4 }
  0x18   :  { %p4774_p10 = pnand %p4772_p9, %p4769_p8 }
  0x1a   :  { %4777 = shalt.err (!%p4774_p10)
}
  0x1b   :  { %s4778_s12 = scalar_lea.vmem %s58_s24, 32768  ;;  %p4783_p12 = scmp.lt.s32.totalorder %s58_s24, %s58_s24 }
  0x1c   :  { %p4779_p11 = scmp.ne.s32.totalorder %s58_s24, %s4778_s12  ;;  %p4784_p13 = scmp.lt.s32.totalorder %s4778_s12, %s4778_s12 }
  0x1e   :  { %p4785_p0 = por %p4784_p13, %p4783_p12 }
  0x20   :  { %p4786_p1 = pnand %p4785_p0, %p4779_p11 }
  0x22   :  { %4789 = shalt.err (!%p4786_p1)
}
  0x23   :  { %s4890_s1 = smov 256   ;;  %s4891_s10 = smov 16  }
  0x24   :  { %63 = dma.hbm_to_vmem [thread:$0]  %s5181_s4, 32768, %s58_s24, [#allocation10], %s4890_s1, %s4890_s1, %s4891_s10  }
  0x25   :  { %s4892_s15 = smov [#allocation3]   ;;  %s4893_s17 = smov [#allocation8]  }
  0x26   :  { %s24_s16 = sshll.u32 %s4892_s15, 4  ;;  %s46_s18 = sshll.u32 %s4893_s17, 4  ;;  %s25_s16 = int_to_ptr.vmem [resolvable:$true] %s24_s16  ;;  %s47_s18 = int_to_ptr.vmem [resolvable:$true] %s46_s18 }
  0x27   :  { %s4790_s21 = scalar_lea.hbm %s5177_s0, 128 }
  0x28   :  { %p4791_p2 = scmp.ne.s32.totalorder %s5177_s0, %s4790_s21  ;;  %p4794_p3 = scmp.lt.u32.totalorder %s4790_s21, %s5177_s0 }
  0x2a   :  { %p4796_p4 = pnand %p4794_p3, %p4791_p2 }
  0x2c   :  { %4799 = shalt.err (!%p4796_p4)
}
  0x2d   :  { %s4800_s4 = scalar_lea.vmem %s25_s16, 128  ;;  %p4805_p6 = scmp.lt.s32.totalorder %s25_s16, %s25_s16 }
  0x2e   :  { %p4801_p5 = scmp.ne.s32.totalorder %s25_s16, %s4800_s4  ;;  %p4806_p7 = scmp.lt.s32.totalorder %s4800_s4, %s4800_s4 }
  0x30   :  { %p4807_p8 = por %p4806_p7, %p4805_p6 }
  0x32   :  { %p4808_p9 = pnand %p4807_p8, %p4801_p5 }
  0x34   :  { %4811 = shalt.err (!%p4808_p9)
}
  0x35   :  { %27 = dma.hbm_to_vmem [thread:$0]  %s5177_s0, 128, %s25_s16, [#allocation4]  }
  0x36   :  { %s4812_s30 = scalar_lea.hbm %s5179_s2, 128 }
  0x37   :  { %p4813_p10 = scmp.ne.s32.totalorder %s5179_s2, %s4812_s30  ;;  %p4816_p11 = scmp.lt.u32.totalorder %s4812_s30, %s5179_s2 }
  0x39   :  { %p4818_p12 = pnand %p4816_p11, %p4813_p10 }
  0x3b   :  { %4821 = shalt.err (!%p4818_p12)
}
  0x3c   :  { %s4822_s13 = scalar_lea.vmem %s47_s18, 128  ;;  %p4827_p0 = scmp.lt.s32.totalorder %s47_s18, %s47_s18 }
  0x3d   :  { %p4823_p13 = scmp.ne.s32.totalorder %s47_s18, %s4822_s13  ;;  %p4828_p1 = scmp.lt.s32.totalorder %s4822_s13, %s4822_s13 }
  0x3f   :  { %p4829_p2 = por %p4828_p1, %p4827_p0 }
  0x41   :  { %p4830_p3 = pnand %p4829_p2, %p4823_p13 }
  0x43   :  { %4833 = shalt.err (!%p4830_p3)
}
  0x44   :  { %49 = dma.hbm_to_vmem [thread:$0]  %s5179_s2, 128, %s47_s18, [#allocation7]  }
  0x45   :  { %s4894_s15 = smov [#allocation11]   ;;  %s4834_s20 = scalar_lea.hbm %s5184_s7, 4096 }
  0x46   :  { %s73_s16 = sshll.u32 %s4894_s15, 4  ;;  %p4835_p4 = scmp.ne.s32.totalorder %s5184_s7, %s4834_s20  ;;  %s74_s16 = int_to_ptr.vmem [resolvable:$true] %s73_s16 }
  0x47   :  { %p4838_p5 = scmp.lt.u32.totalorder %s4834_s20, %s5184_s7 }
  0x49   :  { %p4840_p6 = pnand %p4838_p5, %p4835_p4 }
  0x4b   :  { %4843 = shalt.err (!%p4840_p6)
}
  0x4c   :  { %s4844_s26 = scalar_lea.vmem %s74_s16, 4096  ;;  %p4849_p8 = scmp.lt.s32.totalorder %s74_s16, %s74_s16 }
  0x4d   :  { %p4845_p7 = scmp.ne.s32.totalorder %s74_s16, %s4844_s26  ;;  %p4850_p9 = scmp.lt.s32.totalorder %s4844_s26, %s4844_s26 }
  0x4f   :  { %p4851_p10 = por %p4850_p9, %p4849_p8 }
  0x51   :  { %p4852_p11 = pnand %p4851_p10, %p4845_p7 }
  0x53   :  { %4855 = shalt.err (!%p4852_p11)
}
  0x54   :  { %s4895_s2 = smov 64   ;;  %s4896_s18 = smov 4  }
  0x55   :  { %79 = dma.hbm_to_vmem [thread:$0]  %s5184_s7, 4096, %s74_s16, [#allocation10], %s4895_s2, %s4895_s2, %s4896_s18  }
  0x56   :  { %4878 = dma.done.wait [#allocation4], 128  }
  0x57   :  { %4879 = vsyncadd [#allocation4], 4294967168 }
  0x58   :  { %4880 = dma.done.wait [#allocation7], 16512  }
  0x59   :  { %4881 = vsyncadd [#allocation7], 4294950784 }
  0x5a   :  { %4882 = dma.done.wait [#allocation10], 36864  }
  0x5b   :  { %4883 = vsyncadd [#allocation10], 4294930432  ;;  %v120_v0 = vld [vmem:[#allocation6] sm:$0xff]  ;;  %v121_v2 = vld [vmem:[#allocation6 + $0x8] sm:$0xff]  ;;  %v4897_v57 = vmov 0  }
  0x5c   :  { %v124_v1 = vld [vmem:[#allocation6 + $0x20] sm:$0xff]  ;;  %v125_v4 = vld [vmem:[#allocation6 + $0x28] sm:$0xff]  ;;  %v110_v53 = vld [vmem:[#allocation3] sm:$0xff] }
  0x5d   :  { %v3804_v3 = vcombine.high %v120_v0, %v124_v1  ;;  %v3803_v5 = vcombine.low %v120_v0, %v124_v1  ;;  %v128_v6 = vld [vmem:[#allocation6 + $0x40] sm:$0xff]  ;;  %v3806_v8 = vcombine.high %v121_v2, %v125_v4  ;;  %v3805_v9 = vcombine.low %v121_v2, %v125_v4  ;;  %v129_v11 = vld [vmem:[#allocation6 + $0x48] sm:$0xff] }
  0x5e   :  { %v132_v7 = vld [vmem:[#allocation6 + $0x60] sm:$0xff]  ;;  %v133_v12 = vld [vmem:[#allocation6 + $0x68] sm:$0xff]  ;;  %v5010_v58 = vmax.bf16 %v4897_v57, %v110_v53 }
  0x5f   :  { %v3812_v10 = vcombine.high %v128_v6, %v132_v7  ;;  %v136_v13 = vld [vmem:[#allocation6 + $0x80] sm:$0xff]  ;;  %895 = vmatprep.subr.bf16.mxu0 %v3804_v3  ;;  %v3814_v14 = vcombine.high %v129_v11, %v133_v12  ;;  %v137_v16 = vld [vmem:[#allocation6 + $0x88] sm:$0xff]  ;;  %936 = vmatprep.subr.bf16.mxu1 %v3806_v8  ;;  %v3811_v18 = vcombine.low %v128_v6, %v132_v7 }
  0x60   :  { %v140_v15 = vld [vmem:[#allocation6 + $0xa0] sm:$0xff]  ;;  %v141_v17 = vld [vmem:[#allocation6 + $0xa8] sm:$0xff]  ;;  %896 = vmatpush1.bf16.msra.mxu0 %v3803_v5  ;;  %937 = vmatpush1.bf16.msra.mxu1 %v3805_v9  ;;  %v3813_v19 = vcombine.low %v129_v11, %v133_v12  ;;  %v5014_v62 = vcombine.high %v5010_v58, %v5010_v58 }
  0x61   :  { %897 = vmatprep.subr.bf16.mxu0 %v3812_v10  ;;  %v3820_v20 = vcombine.high %v136_v13, %v140_v15  ;;  %938 = vmatprep.subr.bf16.mxu1 %v3814_v14  ;;  %v3822_v21 = vcombine.high %v137_v16, %v141_v17  ;;  %v144_v22 = vld [vmem:[#allocation6 + $0xc0] sm:$0xff]  ;;  %v145_v24 = vld [vmem:[#allocation6 + $0xc8] sm:$0xff]  ;;  %v3819_v26 = vcombine.low %v136_v13, %v140_v15 }
  0x62   :  { %v148_v23 = vld [vmem:[#allocation6 + $0xe0] sm:$0xff]  ;;  %v149_v25 = vld [vmem:[#allocation6 + $0xe8] sm:$0xff]  ;;  %v3821_v27 = vcombine.low %v137_v16, %v141_v17  ;;  %927 = vmatprep.mubr.bf16.mxu0 %v5014_v62  ;;  %968 = vmatprep.mubr.bf16.mxu1 %v5014_v62 }
  0x63   :  { %v3828_v28 = vcombine.high %v144_v22, %v148_v23  ;;  %v3830_v29 = vcombine.high %v145_v24, %v149_v25  ;;  %v152_v30 = vld [vmem:[#allocation6 + $0x100] sm:$0xff]  ;;  %v153_v32 = vld [vmem:[#allocation6 + $0x108] sm:$0xff]  ;;  %v3827_v34 = vcombine.low %v144_v22, %v148_v23  ;;  %v3829_v35 = vcombine.low %v145_v24, %v149_v25 }
  0x64   :  { %898 = vmatpush1.bf16.msra.mxu0 %v3811_v18  ;;  %939 = vmatpush1.bf16.msra.mxu1 %v3813_v19  ;;  %v156_v31 = vld [vmem:[#allocation6 + $0x120] sm:$0xff]  ;;  %v157_v33 = vld [vmem:[#allocation6 + $0x128] sm:$0xff] }
  0x65   :  { %899 = vmatprep.subr.bf16.mxu0 %v3820_v20  ;;  %940 = vmatprep.subr.bf16.mxu1 %v3822_v21  ;;  %v3836_v36 = vcombine.high %v152_v30, %v156_v31  ;;  %v3838_v37 = vcombine.high %v153_v32, %v157_v33  ;;  %v160_v38 = vld [vmem:[#allocation6 + $0x140] sm:$0xff]  ;;  %v161_v40 = vld [vmem:[#allocation6 + $0x148] sm:$0xff]  ;;  %v3835_v42 = vcombine.low %v152_v30, %v156_v31 }
  0x66   :  { %v164_v39 = vld [vmem:[#allocation6 + $0x160] sm:$0xff]  ;;  %v165_v41 = vld [vmem:[#allocation6 + $0x168] sm:$0xff]  ;;  %v3837_v43 = vcombine.low %v153_v32, %v157_v33 }
  0x67   :  { %v3844_v44 = vcombine.high %v160_v38, %v164_v39  ;;  %v3846_v45 = vcombine.high %v161_v40, %v165_v41  ;;  %v168_v46 = vld [vmem:[#allocation6 + $0x180] sm:$0xff]  ;;  %v169_v48 = vld [vmem:[#allocation6 + $0x188] sm:$0xff]  ;;  %v3843_v50 = vcombine.low %v160_v38, %v164_v39  ;;  %v3845_v51 = vcombine.low %v161_v40, %v165_v41 }
  0x68   :  { %900 = vmatpush1.bf16.msra.mxu0 %v3819_v26  ;;  %941 = vmatpush1.bf16.msra.mxu1 %v3821_v27  ;;  %v172_v47 = vld [vmem:[#allocation6 + $0x1a0] sm:$0xff]  ;;  %v173_v49 = vld [vmem:[#allocation6 + $0x1a8] sm:$0xff] }
  0x69   :  { %901 = vmatprep.subr.bf16.mxu0 %v3828_v28  ;;  %942 = vmatprep.subr.bf16.mxu1 %v3830_v29  ;;  %v3852_v52 = vcombine.high %v168_v46, %v172_v47  ;;  %v3854_v54 = vcombine.high %v169_v48, %v173_v49  ;;  %v176_v55 = vld [vmem:[#allocation6 + $0x1c0] sm:$0xff]  ;;  %v177_v59 = vld [vmem:[#allocation6 + $0x1c8] sm:$0xff]  ;;  %v3851_v61 = vcombine.low %v168_v46, %v172_v47 }
  0x6a   :  { %v180_v56 = vld [vmem:[#allocation6 + $0x1e0] sm:$0xff]  ;;  %v181_v60 = vld [vmem:[#allocation6 + $0x1e8] sm:$0xff]  ;;  %v3853_v63 = vcombine.low %v169_v48, %v173_v49 }
  0x6b   :  { %v3860_v0 = vcombine.high %v176_v55, %v180_v56  ;;  %v3862_v1 = vcombine.high %v177_v59, %v181_v60  ;;  %v184_v2 = vld [vmem:[#allocation6 + $0x200] sm:$0xff]  ;;  %v185_v4 = vld [vmem:[#allocation6 + $0x208] sm:$0xff]  ;;  %v3859_v6 = vcombine.low %v176_v55, %v180_v56  ;;  %v3861_v7 = vcombine.low %v177_v59, %v181_v60 }
  0x6c   :  { %902 = vmatpush1.bf16.msra.mxu0 %v3827_v34  ;;  %943 = vmatpush1.bf16.msra.mxu1 %v3829_v35  ;;  %v188_v3 = vld [vmem:[#allocation6 + $0x220] sm:$0xff]  ;;  %v189_v5 = vld [vmem:[#allocation6 + $0x228] sm:$0xff] }
  0x6d   :  { %903 = vmatprep.subr.bf16.mxu0 %v3836_v36  ;;  %944 = vmatprep.subr.bf16.mxu1 %v3838_v37  ;;  %v3868_v8 = vcombine.high %v184_v2, %v188_v3  ;;  %v3870_v9 = vcombine.high %v185_v4, %v189_v5  ;;  %v192_v10 = vld [vmem:[#allocation6 + $0x240] sm:$0xff]  ;;  %v193_v12 = vld [vmem:[#allocation6 + $0x248] sm:$0xff]  ;;  %v3867_v14 = vcombine.low %v184_v2, %v188_v3  ;;  %v126_v2 = vld [vmem:[#allocation6 + $0x30] sm:$0xff] }
  0x6e   :  { %v196_v11 = vld [vmem:[#allocation6 + $0x260] sm:$0xff]  ;;  %v197_v13 = vld [vmem:[#allocation6 + $0x268] sm:$0xff]  ;;  %v3869_v15 = vcombine.low %v185_v4, %v189_v5  ;;  %v123_v5 = vld [vmem:[#allocation6 + $0x18] sm:$0xff] }
  0x6f   :  { %v3876_v16 = vcombine.high %v192_v10, %v196_v11  ;;  %v3878_v17 = vcombine.high %v193_v12, %v197_v13  ;;  %v200_v18 = vld [vmem:[#allocation6 + $0x280] sm:$0xff]  ;;  %v201_v20 = vld [vmem:[#allocation6 + $0x288] sm:$0xff]  ;;  %v3875_v22 = vcombine.low %v192_v10, %v196_v11  ;;  %v3877_v23 = vcombine.low %v193_v12, %v197_v13  ;;  %v134_v10 = vld [vmem:[#allocation6 + $0x70] sm:$0xff] }
  0x70   :  { %904 = vmatpush1.bf16.msra.mxu0 %v3835_v42  ;;  %945 = vmatpush1.bf16.msra.mxu1 %v3837_v43  ;;  %v204_v19 = vld [vmem:[#allocation6 + $0x2a0] sm:$0xff]  ;;  %v205_v21 = vld [vmem:[#allocation6 + $0x2a8] sm:$0xff]  ;;  %v131_v13 = vld [vmem:[#allocation6 + $0x58] sm:$0xff] }
  0x71   :  { %905 = vmatprep.subr.bf16.mxu0 %v3844_v44  ;;  %946 = vmatprep.subr.bf16.mxu1 %v3846_v45  ;;  %v3884_v24 = vcombine.high %v200_v18, %v204_v19  ;;  %v3886_v25 = vcombine.high %v201_v20, %v205_v21  ;;  %v208_v26 = vld [vmem:[#allocation6 + $0x2c0] sm:$0xff]  ;;  %v209_v28 = vld [vmem:[#allocation6 + $0x2c8] sm:$0xff]  ;;  %v3883_v30 = vcombine.low %v200_v18, %v204_v19  ;;  %v138_v18 = vld [vmem:[#allocation6 + $0x90] sm:$0xff] }
  0x72   :  { %v212_v27 = vld [vmem:[#allocation6 + $0x2e0] sm:$0xff]  ;;  %v213_v29 = vld [vmem:[#allocation6 + $0x2e8] sm:$0xff]  ;;  %v3885_v31 = vcombine.low %v201_v20, %v205_v21  ;;  %v142_v19 = vld [vmem:[#allocation6 + $0xb0] sm:$0xff] }
  0x73   :  { %v3892_v32 = vcombine.high %v208_v26, %v212_v27  ;;  %v216_v33 = vld [vmem:[#allocation6 + $0x300] sm:$0xff]  ;;  %v3894_v34 = vcombine.high %v209_v28, %v213_v29  ;;  %v217_v36 = vld [vmem:[#allocation6 + $0x308] sm:$0xff]  ;;  %v3891_v38 = vcombine.low %v208_v26, %v212_v27  ;;  %v3893_v41 = vcombine.low %v209_v28, %v213_v29  ;;  %v150_v26 = vld [vmem:[#allocation6 + $0xf0] sm:$0xff] }
  0x74   :  { %906 = vmatpush1.bf16.msra.mxu0 %v3843_v50  ;;  %947 = vmatpush1.bf16.msra.mxu1 %v3845_v51  ;;  %v220_v35 = vld [vmem:[#allocation6 + $0x320] sm:$0xff]  ;;  %v221_v37 = vld [vmem:[#allocation6 + $0x328] sm:$0xff]  ;;  %v3824_v28 = vcombine.high %v138_v18, %v142_v19  ;;  %v147_v29 = vld [vmem:[#allocation6 + $0xd8] sm:$0xff] }
  0x75   :  { %907 = vmatprep.subr.bf16.mxu0 %v3852_v52  ;;  %948 = vmatprep.subr.bf16.mxu1 %v3854_v54  ;;  %v224_v39 = vld [vmem:[#allocation6 + $0x340] sm:$0xff]  ;;  %v3900_v42 = vcombine.high %v216_v33, %v220_v35  ;;  %v225_v43 = vld [vmem:[#allocation6 + $0x348] sm:$0xff]  ;;  %v3902_v45 = vcombine.high %v217_v36, %v221_v37  ;;  %v3899_v46 = vcombine.low %v216_v33, %v220_v35  ;;  %v154_v33 = vld [vmem:[#allocation6 + $0x110] sm:$0xff] }
  0x76   :  { %v228_v40 = vld [vmem:[#allocation6 + $0x360] sm:$0xff]  ;;  %v229_v44 = vld [vmem:[#allocation6 + $0x368] sm:$0xff]  ;;  %v3901_v49 = vcombine.low %v217_v36, %v221_v37  ;;  %v155_v37 = vld [vmem:[#allocation6 + $0x118] sm:$0xff] }
  0x77   :  { %v232_v47 = vld [vmem:[#allocation6 + $0x380] sm:$0xff]  ;;  %v3908_v50 = vcombine.high %v224_v39, %v228_v40  ;;  %v233_v51 = vld [vmem:[#allocation6 + $0x388] sm:$0xff]  ;;  %v3910_v53 = vcombine.high %v225_v43, %v229_v44  ;;  %v3907_v54 = vcombine.low %v224_v39, %v228_v40  ;;  %v3909_v57 = vcombine.low %v225_v43, %v229_v44  ;;  %v163_v44 = vld [vmem:[#allocation6 + $0x158] sm:$0xff] }
  0x78   :  { %908 = vmatpush1.bf16.msra.mxu0 %v3851_v61  ;;  %949 = vmatpush1.bf16.msra.mxu1 %v3853_v63  ;;  %v236_v48 = vld [vmem:[#allocation6 + $0x3a0] sm:$0xff]  ;;  %v237_v52 = vld [vmem:[#allocation6 + $0x3a8] sm:$0xff] }
  0x79   :  { %909 = vmatprep.subr.bf16.mxu0 %v3860_v0  ;;  %950 = vmatprep.subr.bf16.mxu1 %v3862_v1  ;;  %v240_v55 = vld [vmem:[#allocation6 + $0x3c0] sm:$0xff]  ;;  %v3916_v59 = vcombine.high %v232_v47, %v236_v48  ;;  %v241_v60 = vld [vmem:[#allocation6 + $0x3c8] sm:$0xff]  ;;  %v3918_v63 = vcombine.high %v233_v51, %v237_v52  ;;  %v3915_v0 = vcombine.low %v232_v47, %v236_v48  ;;  %v122_v1 = vld [vmem:[#allocation6 + $0x10] sm:$0xff] }
  0x7a   :  { %v244_v56 = vld [vmem:[#allocation6 + $0x3e0] sm:$0xff]  ;;  %v245_v61 = vld [vmem:[#allocation6 + $0x3e8] sm:$0xff]  ;;  %v3917_v3 = vcombine.low %v233_v51, %v237_v52  ;;  %v3808_v12 = vcombine.high %v122_v1, %v126_v2  ;;  %v170_v48 = vld [vmem:[#allocation6 + $0x190] sm:$0xff] }
  0x7b   :  { %v3924_v4 = vcombine.high %v240_v55, %v244_v56  ;;  %v3925_v11 = vcombine.low %v241_v60, %v245_v61  ;;  %v171_v52 = vld [vmem:[#allocation6 + $0x198] sm:$0xff] }
  0x7c   :  { %910 = vmatpush1.bf16.msra.mxu0 %v3859_v6  ;;  %951 = vmatpush1.bf16.msra.mxu1 %v3861_v7  ;;  %v127_v6 = vld [vmem:[#allocation6 + $0x38] sm:$0xff]  ;;  %v3926_v7 = vcombine.high %v241_v60, %v245_v61 }
  0x7d   :  { %911 = vmatprep.subr.bf16.mxu0 %v3868_v8  ;;  %952 = vmatprep.subr.bf16.mxu1 %v3870_v9  ;;  %v3923_v8 = vcombine.low %v240_v55, %v244_v56  ;;  %v130_v9 = vld [vmem:[#allocation6 + $0x50] sm:$0xff]  ;;  %v3809_v20 = vcombine.low %v123_v5, %v127_v6  ;;  %v179_v61 = vld [vmem:[#allocation6 + $0x1d8] sm:$0xff] }
  0x7e   :  { %v3816_v21 = vcombine.high %v130_v9, %v134_v10  ;;  %v178_v56 = vld [vmem:[#allocation6 + $0x1d0] sm:$0xff] }
  0x80   :  { %912 = vmatpush1.bf16.msra.mxu0 %v3867_v14  ;;  %953 = vmatpush1.bf16.msra.mxu1 %v3869_v15  ;;  %v135_v14 = vld [vmem:[#allocation6 + $0x78] sm:$0xff]  ;;  %v3810_v15 = vcombine.high %v123_v5, %v127_v6 }
  0x81   :  { %913 = vmatprep.subr.bf16.mxu0 %v3876_v16  ;;  %954 = vmatprep.subr.bf16.mxu1 %v3878_v17  ;;  %v5020_v16 = vcombine.low %v5010_v58, %v5010_v58  ;;  %v3807_v17 = vcombine.low %v122_v1, %v126_v2  ;;  %v146_v58 = vld [vmem:[#allocation6 + $0xd0] sm:$0xff]  ;;  %v3817_v27 = vcombine.low %v131_v13, %v135_v14  ;;  %v187_v6 = vld [vmem:[#allocation6 + $0x218] sm:$0xff] }
  0x82   :  { %v3832_v36 = vcombine.high %v146_v58, %v150_v26  ;;  %v3831_v40 = vcombine.low %v146_v58, %v150_v26  ;;  %v186_v2 = vld [vmem:[#allocation6 + $0x210] sm:$0xff] }
  0x83   :  { %v210_v26 = vld [vmem:[#allocation6 + $0x2d0] sm:$0xff] }
  0x84   :  { %914 = vmatpush1.bf16.msra.mxu0 %v3875_v22  ;;  %955 = vmatpush1.bf16.msra.mxu1 %v3877_v23  ;;  %v139_v22 = vld [vmem:[#allocation6 + $0x98] sm:$0xff] }
  0x85   :  { %915 = vmatprep.subr.bf16.mxu0 %v3884_v24  ;;  %956 = vmatprep.subr.bf16.mxu1 %v3886_v25  ;;  %v143_v23 = vld [vmem:[#allocation6 + $0xb8] sm:$0xff]  ;;  %v3818_v24 = vcombine.high %v131_v13, %v135_v14  ;;  %v3815_v25 = vcombine.low %v130_v9, %v134_v10  ;;  %v194_v10 = vld [vmem:[#allocation6 + $0x250] sm:$0xff] }
  0x86   :  { %v3825_v35 = vcombine.low %v139_v22, %v143_v23  ;;  %v195_v14 = vld [vmem:[#allocation6 + $0x258] sm:$0xff] }
  0x88   :  { %916 = vmatpush1.bf16.msra.mxu0 %v3883_v30  ;;  %957 = vmatpush1.bf16.msra.mxu1 %v3885_v31  ;;  %v151_v30 = vld [vmem:[#allocation6 + $0xf8] sm:$0xff]  ;;  %v3826_v31 = vcombine.high %v139_v22, %v143_v23 }
  0x89   :  { %917 = vmatprep.subr.bf16.mxu0 %v3892_v32  ;;  %958 = vmatprep.subr.bf16.mxu1 %v3894_v34  ;;  %v3823_v32 = vcombine.low %v138_v18, %v142_v19  ;;  %v158_v34 = vld [vmem:[#allocation6 + $0x130] sm:$0xff]  ;;  %v3834_v39 = vcombine.high %v147_v29, %v151_v30  ;;  %v3833_v43 = vcombine.low %v147_v29, %v151_v30  ;;  %v203_v23 = vld [vmem:[#allocation6 + $0x298] sm:$0xff] }
  0x8a   :  { %v3839_v47 = vcombine.low %v154_v33, %v158_v34  ;;  %v202_v19 = vld [vmem:[#allocation6 + $0x290] sm:$0xff]  ;;  %v211_v30 = vld [vmem:[#allocation6 + $0x2d8] sm:$0xff] }
  0x8c   :  { %918 = vmatpush1.bf16.msra.mxu0 %v3891_v38  ;;  %959 = vmatpush1.bf16.msra.mxu1 %v3893_v41  ;;  %v159_v38 = vld [vmem:[#allocation6 + $0x138] sm:$0xff]  ;;  %v162_v41 = vld [vmem:[#allocation6 + $0x150] sm:$0xff] }
  0x8d   :  { %919 = vmatprep.subr.bf16.mxu0 %v3900_v42  ;;  %960 = vmatprep.subr.bf16.mxu1 %v3902_v45  ;;  %v166_v42 = vld [vmem:[#allocation6 + $0x170] sm:$0xff]  ;;  %v167_v45 = vld [vmem:[#allocation6 + $0x178] sm:$0xff] }
  0x8e   :  { %v3848_v51 = vcombine.high %v162_v41, %v166_v42  ;;  %v3847_v55 = vcombine.low %v162_v41, %v166_v42  ;;  %v226_v42 = vld [vmem:[#allocation6 + $0x350] sm:$0xff] }
  0x90   :  { %920 = vmatpush1.bf16.msra.mxu0 %v3899_v46  ;;  %961 = vmatpush1.bf16.msra.mxu1 %v3901_v49  ;;  %v3842_v46 = vcombine.high %v155_v37, %v159_v38  ;;  %v174_v49 = vld [vmem:[#allocation6 + $0x1b0] sm:$0xff] }
  0x91   :  { %921 = vmatprep.subr.bf16.mxu0 %v3908_v50  ;;  %962 = vmatprep.subr.bf16.mxu1 %v3910_v53  ;;  %v3841_v50 = vcombine.low %v155_v37, %v159_v38  ;;  %v175_v53 = vld [vmem:[#allocation6 + $0x1b8] sm:$0xff]  ;;  %v3856_v60 = vcombine.high %v170_v48, %v174_v49  ;;  %v3855_v1 = vcombine.low %v170_v48, %v174_v49  ;;  %v234_v49 = vld [vmem:[#allocation6 + $0x390] sm:$0xff] }
  0x92   :  { %v219_v38 = vld [vmem:[#allocation6 + $0x318] sm:$0xff] }
  0x94   :  { %922 = vmatpush1.bf16.msra.mxu0 %v3907_v54  ;;  %963 = vmatpush1.bf16.msra.mxu1 %v3909_v57  ;;  %v3850_v54 = vcombine.high %v163_v44, %v167_v45  ;;  %v182_v57 = vld [vmem:[#allocation6 + $0x1f0] sm:$0xff] }
  0x95   :  { %923 = vmatprep.subr.bf16.mxu0 %v3916_v59  ;;  %964 = vmatprep.subr.bf16.mxu1 %v3918_v63  ;;  %v3849_v59 = vcombine.low %v163_v44, %v167_v45  ;;  %v183_v63 = vld [vmem:[#allocation6 + $0x1f8] sm:$0xff]  ;;  %v3864_v5 = vcombine.high %v178_v56, %v182_v57  ;;  %v3863_v9 = vcombine.low %v178_v56, %v182_v57  ;;  %v242_v57 = vld [vmem:[#allocation6 + $0x3d0] sm:$0xff] }
  0x96   :  { %v227_v45 = vld [vmem:[#allocation6 + $0x358] sm:$0xff] }
  0x98   :  { %924 = vmatpush1.bf16.msra.mxu0 %v3915_v0  ;;  %965 = vmatpush1.bf16.msra.mxu1 %v3917_v3  ;;  %v3858_v0 = vcombine.high %v171_v52, %v175_v53  ;;  %v190_v3 = vld [vmem:[#allocation6 + $0x230] sm:$0xff] }
  0x99   :  { %925 = vmatprep.subr.bf16.mxu0 %v3924_v4  ;;  %966 = vmatprep.subr.bf16.mxu1 %v3926_v7  ;;  %v3857_v4 = vcombine.low %v171_v52, %v175_v53  ;;  %v191_v7 = vld [vmem:[#allocation6 + $0x238] sm:$0xff]  ;;  %v3872_v13 = vcombine.high %v186_v2, %v190_v3  ;;  %v3871_v18 = vcombine.low %v186_v2, %v190_v3 }
  0x9a   :  { %v235_v53 = vld [vmem:[#allocation6 + $0x398] sm:$0xff] }
  0x9c   :  { %926 = vmatpush1.bf16.msra.mxu0 %v3923_v8  ;;  %967 = vmatpush1.bf16.msra.mxu1 %v3925_v11  ;;  %v3866_v8 = vcombine.high %v179_v61, %v183_v63  ;;  %v198_v11 = vld [vmem:[#allocation6 + $0x270] sm:$0xff] }
  0x9d   :  { %977 = vmatprep.subr.bf16.mxu0 %v3808_v12  ;;  %1018 = vmatprep.subr.bf16.mxu1 %v3810_v15  ;;  %v3865_v12 = vcombine.low %v179_v61, %v183_v63  ;;  %v199_v15 = vld [vmem:[#allocation6 + $0x278] sm:$0xff]  ;;  %v3880_v22 = vcombine.high %v194_v10, %v198_v11  ;;  %v3879_v58 = vcombine.low %v194_v10, %v198_v11  ;;  %v4305_v11 = vld [vmem:[#allocation9 + $0x8] ss:$16 sps:$4 sm:$0xff]  }
  0x9e   :  { %v243_v63 = vld [vmem:[#allocation6 + $0x3d8] sm:$0xff] }
  0x9f   :  { %928 = vmatmul.mubr.bf16.vlgmr.msra.gmra.mrb[0].mxu0 %v5020_v16  ;;  %969 = vmatmul.mubr.bf16.vlgmr.msra.gmra.mrb[0].mxu1 %v5020_v16  ;;  %v4302_v10 = vld [vmem:[#allocation9] ss:$16 sps:$4 sm:$0xff]  }
  0xa0   :  { %978 = vmatpush1.bf16.msra.mxu0 %v3807_v17  ;;  %1019 = vmatpush1.bf16.msra.mxu1 %v3809_v20  ;;  %v3874_v17 = vcombine.high %v187_v6, %v191_v7  ;;  %v206_v20 = vld [vmem:[#allocation6 + $0x2b0] sm:$0xff] }
  0xa1   :  { %979 = vmatprep.subr.bf16.mxu0 %v3816_v21  ;;  %1020 = vmatprep.subr.bf16.mxu1 %v3818_v24  ;;  %v3873_v21 = vcombine.low %v187_v6, %v191_v7  ;;  %v207_v24 = vld [vmem:[#allocation6 + $0x2b8] sm:$0xff]  ;;  %v3888_v29 = vcombine.high %v202_v19, %v206_v20 }
  0xa2   :  { %1009 = vmatprep.mubr.bf16.mxu0 %v5014_v62  ;;  %1050 = vmatprep.mubr.bf16.mxu1 %v5014_v62  ;;  %v3840_v62 = vcombine.high %v154_v33, %v158_v34  ;;  %v3887_v33 = vcombine.low %v202_v19, %v206_v20  ;;  %v218_v34 = vld [vmem:[#allocation6 + $0x310] sm:$0xff]  ;;  %v4314_v19 = vld [vmem:[#allocation9 + $0x40] ss:$16 sps:$4 sm:$0xff]   ;;  %v4322_v20 = vld [vmem:[#allocation9 + $0x64] ss:$16 sps:$4 sm:$0xff]  }
  0xa4   :  { %980 = vmatpush1.bf16.msra.mxu0 %v3815_v25  ;;  %1021 = vmatpush1.bf16.msra.mxu1 %v3817_v27  ;;  %v3882_v25 = vcombine.high %v195_v14, %v199_v15  ;;  %v214_v27 = vld [vmem:[#allocation6 + $0x2f0] sm:$0xff] }
  0xa5   :  { %981 = vmatprep.subr.bf16.mxu0 %v3824_v28  ;;  %1022 = vmatprep.subr.bf16.mxu1 %v3826_v31  ;;  %v3881_v28 = vcombine.low %v195_v14, %v199_v15  ;;  %v215_v31 = vld [vmem:[#allocation6 + $0x2f8] sm:$0xff]  ;;  %v3896_v37 = vcombine.high %v210_v26, %v214_v27  ;;  %v3895_v41 = vcombine.low %v210_v26, %v214_v27  ;;  %v4311_v15 = vld [vmem:[#allocation9 + $0x28] ss:$16 sps:$4 sm:$0xff]  }
  0xa6   :  { %v4308_v14 = vld [vmem:[#allocation9 + $0x20] ss:$16 sps:$4 sm:$0xff]   ;;  %v4329_v26 = vld [vmem:[#allocation9 + $0x88] ss:$16 sps:$4 sm:$0xff]   ;;  %v4334_v27 = vld [vmem:[#allocation9 + $0xa4] ss:$16 sps:$4 sm:$0xff]  }
  0xa8   :  { %982 = vmatpush1.bf16.msra.mxu0 %v3823_v32  ;;  %1023 = vmatpush1.bf16.msra.mxu1 %v3825_v35  ;;  %v3890_v32 = vcombine.high %v203_v23, %v207_v24  ;;  %v222_v35 = vld [vmem:[#allocation6 + $0x330] sm:$0xff] }
  0xa9   :  { %983 = vmatprep.subr.bf16.mxu0 %v3832_v36  ;;  %1024 = vmatprep.subr.bf16.mxu1 %v3834_v39  ;;  %v3889_v36 = vcombine.low %v203_v23, %v207_v24  ;;  %v223_v39 = vld [vmem:[#allocation6 + $0x338] sm:$0xff]  ;;  %v3904_v44 = vcombine.high %v218_v34, %v222_v35  ;;  %v3903_v48 = vcombine.low %v218_v34, %v222_v35  ;;  %v4323_v23 = vld [vmem:[#allocation9 + $0x68] ss:$16 sps:$4 sm:$0xff]  }
  0xaa   :  { %v4328_v24 = vld [vmem:[#allocation9 + $0x84] ss:$16 sps:$4 sm:$0xff]   ;;  %v4341_v34 = vld [vmem:[#allocation9 + $0xc8] ss:$16 sps:$4 sm:$0xff]  }
  0xab   :  { %v4346_v35 = vld [vmem:[#allocation9 + $0xe4] ss:$16 sps:$4 sm:$0xff]  }
  0xac   :  { %984 = vmatpush1.bf16.msra.mxu0 %v3831_v40  ;;  %1025 = vmatpush1.bf16.msra.mxu1 %v3833_v43  ;;  %v3898_v40 = vcombine.high %v211_v30, %v215_v31  ;;  %v230_v43 = vld [vmem:[#allocation6 + $0x370] sm:$0xff] }
  0xad   :  { %985 = vmatprep.subr.bf16.mxu0 %v3840_v62  ;;  %1026 = vmatprep.subr.bf16.mxu1 %v3842_v46  ;;  %v3897_v62 = vcombine.low %v211_v30, %v215_v31  ;;  %v231_v46 = vld [vmem:[#allocation6 + $0x378] sm:$0xff]  ;;  %v3912_v52 = vcombine.high %v226_v42, %v230_v43  ;;  %v3911_v56 = vcombine.low %v226_v42, %v230_v43  ;;  %v4335_v30 = vld [vmem:[#allocation9 + $0xa8] ss:$16 sps:$4 sm:$0xff]  }
  0xae   :  { %v4340_v31 = vld [vmem:[#allocation9 + $0xc4] ss:$16 sps:$4 sm:$0xff]   ;;  %v4353_v42 = vld [vmem:[#allocation9 + $0x108] ss:$16 sps:$4 sm:$0xff]  }
  0xaf   :  { %v4358_v43 = vld [vmem:[#allocation9 + $0x124] ss:$16 sps:$4 sm:$0xff]  }
  0xb0   :  { %986 = vmatpush1.bf16.msra.mxu0 %v3839_v47  ;;  %1027 = vmatpush1.bf16.msra.mxu1 %v3841_v50  ;;  %v3906_v47 = vcombine.high %v219_v38, %v223_v39  ;;  %v238_v50 = vld [vmem:[#allocation6 + $0x3b0] sm:$0xff] }
  0xb1   :  { %987 = vmatprep.subr.bf16.mxu0 %v3848_v51  ;;  %1028 = vmatprep.subr.bf16.mxu1 %v3850_v54  ;;  %v3905_v51 = vcombine.low %v219_v38, %v223_v39  ;;  %v239_v54 = vld [vmem:[#allocation6 + $0x3b8] sm:$0xff]  ;;  %v3920_v61 = vcombine.high %v234_v49, %v238_v50  ;;  %v3919_v2 = vcombine.low %v234_v49, %v238_v50  ;;  %v4347_v38 = vld [vmem:[#allocation9 + $0xe8] ss:$16 sps:$4 sm:$0xff]  }
  0xb2   :  { %v3921_v3 = vcombine.low %v235_v53, %v239_v54  ;;  %v4352_v39 = vld [vmem:[#allocation9 + $0x104] ss:$16 sps:$4 sm:$0xff]   ;;  %v4365_v49 = vld [vmem:[#allocation9 + $0x148] ss:$16 sps:$4 sm:$0xff]  }
  0xb3   :  { %v4370_v50 = vld [vmem:[#allocation9 + $0x164] ss:$16 sps:$4 sm:$0xff]  }
  0xb4   :  { %988 = vmatpush1.bf16.msra.mxu0 %v3847_v55  ;;  %1029 = vmatpush1.bf16.msra.mxu1 %v3849_v59  ;;  %v3914_v55 = vcombine.high %v227_v45, %v231_v46  ;;  %v246_v59 = vld [vmem:[#allocation6 + $0x3f0] sm:$0xff] }
  0xb5   :  { %989 = vmatprep.subr.bf16.mxu0 %v3856_v60  ;;  %1030 = vmatprep.subr.bf16.mxu1 %v3858_v0  ;;  %v3913_v60 = vcombine.low %v227_v45, %v231_v46  ;;  %v247_v0 = vld [vmem:[#allocation6 + $0x3f8] sm:$0xff]  ;;  %v3927_v6 = vcombine.low %v242_v57, %v246_v59  ;;  %v4359_v45 = vld [vmem:[#allocation9 + $0x128] ss:$16 sps:$4 sm:$0xff]  }
  0xb6   :  { %v3929_v7 = vcombine.low %v243_v63, %v247_v0  ;;  %v4364_v46 = vld [vmem:[#allocation9 + $0x144] ss:$16 sps:$4 sm:$0xff]  }
  0xb8   :  { %990 = vmatpush1.bf16.msra.mxu0 %v3855_v1  ;;  %1031 = vmatpush1.bf16.msra.mxu1 %v3857_v4  ;;  %v3922_v1 = vcombine.high %v235_v53, %v239_v54  ;;  %v3928_v4 = vcombine.high %v242_v57, %v246_v59  ;;  %v4371_v53 = vld [vmem:[#allocation9 + $0x168] ss:$16 sps:$4 sm:$0xff]   ;;  %v4376_v54 = vld [vmem:[#allocation9 + $0x184] ss:$16 sps:$4 sm:$0xff]  }
  0xb9   :  { %991 = vmatprep.subr.bf16.mxu0 %v3864_v5  ;;  %1032 = vmatprep.subr.bf16.mxu1 %v3866_v8  ;;  %v3930_v5 = vcombine.high %v243_v63, %v247_v0  ;;  %v4304_v8 = vld [vmem:[#allocation9 + $0x4] ss:$16 sps:$4 sm:$0xff]   ;;  %v4377_v57 = vld [vmem:[#allocation9 + $0x188] ss:$16 sps:$4 sm:$0xff]  }
  0xba   :  { %v4382_v59 = vld [vmem:[#allocation9 + $0x1a4] ss:$16 sps:$4 sm:$0xff]   ;;  %v4383_v63 = vld [vmem:[#allocation9 + $0x1a8] ss:$16 sps:$4 sm:$0xff]  }
  0xbb   :  { %v4388_v0 = vld [vmem:[#allocation9 + $0x1c4] ss:$16 sps:$4 sm:$0xff]  }
  0xbc   :  { %992 = vmatpush1.bf16.msra.mxu0 %v3863_v9  ;;  %1033 = vmatpush1.bf16.msra.mxu1 %v3865_v12  ;;  %v4307_v9 = vld [vmem:[#allocation9 + $0xc] ss:$16 sps:$4 sm:$0xff]   ;;  %v4310_v12 = vld [vmem:[#allocation9 + $0x24] ss:$16 sps:$4 sm:$0xff]  }
  0xbd   :  { %993 = vmatprep.subr.bf16.mxu0 %v3872_v13  ;;  %1034 = vmatprep.subr.bf16.mxu1 %v3874_v17  ;;  %v4313_v13 = vld [vmem:[#allocation9 + $0x2c] ss:$16 sps:$4 sm:$0xff]   ;;  %v4316_v17 = vld [vmem:[#allocation9 + $0x44] ss:$16 sps:$4 sm:$0xff]  }
  0xc0   :  { %994 = vmatpush1.bf16.msra.mxu0 %v3871_v18  ;;  %1035 = vmatpush1.bf16.msra.mxu1 %v3873_v21  ;;  %v4319_v18 = vld [vmem:[#allocation9 + $0x4c] ss:$16 sps:$4 sm:$0xff]  }
  0xc1   :  { %995 = vmatprep.subr.bf16.mxu0 %v3880_v22  ;;  %1036 = vmatprep.subr.bf16.mxu1 %v3882_v25  ;;  %v4325_v21 = vld [vmem:[#allocation9 + $0x6c] ss:$16 sps:$4 sm:$0xff]   ;;  %v4320_v22 = vld [vmem:[#allocation9 + $0x60] ss:$16 sps:$4 sm:$0xff]  }
  0xc2   :  { %v4331_v25 = vld [vmem:[#allocation9 + $0x8c] ss:$16 sps:$4 sm:$0xff]  }
  0xc4   :  { %996 = vmatpush1.bf16.msra.mxu0 %v3879_v58  ;;  %1037 = vmatpush1.bf16.msra.mxu1 %v3881_v28  ;;  %v4326_v58 = vld [vmem:[#allocation9 + $0x80] ss:$16 sps:$4 sm:$0xff]   ;;  %v4337_v28 = vld [vmem:[#allocation9 + $0xac] ss:$16 sps:$4 sm:$0xff]  }
  0xc5   :  { %997 = vmatprep.subr.bf16.mxu0 %v3888_v29  ;;  %1038 = vmatprep.subr.bf16.mxu1 %v3890_v32  ;;  %v4332_v29 = vld [vmem:[#allocation9 + $0xa0] ss:$16 sps:$4 sm:$0xff]   ;;  %v4343_v32 = vld [vmem:[#allocation9 + $0xcc] ss:$16 sps:$4 sm:$0xff]  }
  0xc8   :  { %998 = vmatpush1.bf16.msra.mxu0 %v3887_v33  ;;  %1039 = vmatpush1.bf16.msra.mxu1 %v3889_v36  ;;  %v4338_v33 = vld [vmem:[#allocation9 + $0xc0] ss:$16 sps:$4 sm:$0xff]   ;;  %v4349_v36 = vld [vmem:[#allocation9 + $0xec] ss:$16 sps:$4 sm:$0xff]  }
  0xc9   :  { %999 = vmatprep.subr.bf16.mxu0 %v3896_v37  ;;  %1040 = vmatprep.subr.bf16.mxu1 %v3898_v40  ;;  %v4344_v37 = vld [vmem:[#allocation9 + $0xe0] ss:$16 sps:$4 sm:$0xff]   ;;  %v4355_v40 = vld [vmem:[#allocation9 + $0x10c] ss:$16 sps:$4 sm:$0xff]  }
  0xcc   :  { %1000 = vmatpush1.bf16.msra.mxu0 %v3895_v41  ;;  %1041 = vmatpush1.bf16.msra.mxu1 %v3897_v62  ;;  %v4350_v41 = vld [vmem:[#allocation9 + $0x100] ss:$16 sps:$4 sm:$0xff]   ;;  %v4361_v62 = vld [vmem:[#allocation9 + $0x12c] ss:$16 sps:$4 sm:$0xff]  }
  0xcd   :  { %1001 = vmatprep.subr.bf16.mxu0 %v3904_v44  ;;  %1042 = vmatprep.subr.bf16.mxu1 %v3906_v47  ;;  %v4356_v44 = vld [vmem:[#allocation9 + $0x120] ss:$16 sps:$4 sm:$0xff]   ;;  %v4367_v47 = vld [vmem:[#allocation9 + $0x14c] ss:$16 sps:$4 sm:$0xff]  }
  0xd0   :  { %1002 = vmatpush1.bf16.msra.mxu0 %v3903_v48  ;;  %1043 = vmatpush1.bf16.msra.mxu1 %v3905_v51  ;;  %v4362_v48 = vld [vmem:[#allocation9 + $0x140] ss:$16 sps:$4 sm:$0xff]   ;;  %v4373_v51 = vld [vmem:[#allocation9 + $0x16c] ss:$16 sps:$4 sm:$0xff]  }
  0xd1   :  { %1003 = vmatprep.subr.bf16.mxu0 %v3912_v52  ;;  %1044 = vmatprep.subr.bf16.mxu1 %v3914_v55  ;;  %v4368_v52 = vld [vmem:[#allocation9 + $0x160] ss:$16 sps:$4 sm:$0xff]   ;;  %v4379_v55 = vld [vmem:[#allocation9 + $0x18c] ss:$16 sps:$4 sm:$0xff]  }
  0xd4   :  { %1004 = vmatpush1.bf16.msra.mxu0 %v3911_v56  ;;  %1045 = vmatpush1.bf16.msra.mxu1 %v3913_v60  ;;  %v4374_v56 = vld [vmem:[#allocation9 + $0x180] ss:$16 sps:$4 sm:$0xff]   ;;  %v4385_v60 = vld [vmem:[#allocation9 + $0x1ac] ss:$16 sps:$4 sm:$0xff]  }
  0xd5   :  { %1005 = vmatprep.subr.bf16.mxu0 %v3920_v61  ;;  %1046 = vmatprep.subr.bf16.mxu1 %v3922_v1  ;;  %v4380_v61 = vld [vmem:[#allocation9 + $0x1a0] ss:$16 sps:$4 sm:$0xff]   ;;  %v4391_v1 = vld [vmem:[#allocation9 + $0x1cc] ss:$16 sps:$4 sm:$0xff]  }
  0xd8   :  { %1006 = vmatpush1.bf16.msra.mxu0 %v3919_v2  ;;  %1047 = vmatpush1.bf16.msra.mxu1 %v3921_v3  ;;  %v4386_v2 = vld [vmem:[#allocation9 + $0x1c0] ss:$16 sps:$4 sm:$0xff]   ;;  %v4389_v3 = vld [vmem:[#allocation9 + $0x1c8] ss:$16 sps:$4 sm:$0xff]  }
  0xd9   :  { %1007 = vmatprep.subr.bf16.mxu0 %v3928_v4  ;;  %1048 = vmatprep.subr.bf16.mxu1 %v3930_v5  ;;  %v4392_v4 = vld [vmem:[#allocation9 + $0x1e0] ss:$16 sps:$4 sm:$0xff]   ;;  %v4394_v5 = vld [vmem:[#allocation9 + $0x1e4] ss:$16 sps:$4 sm:$0xff]  }
  0xdc   :  { %1008 = vmatpush1.bf16.msra.mxu0 %v3927_v6  ;;  %1049 = vmatpush1.bf16.msra.mxu1 %v3929_v7  ;;  %v4395_v7 = vld [vmem:[#allocation9 + $0x1e8] ss:$16 sps:$4 sm:$0xff]  }
  0xdd   :  { %2941 = vmatprep.subr.bf16.mxu0 %v4304_v8  ;;  %3105 = vmatprep.subr.bf16.mxu1 %v4307_v9  ;;  %v4397_v8 = vld [vmem:[#allocation9 + $0x1ec] ss:$16 sps:$4 sm:$0xff]  }
  0xdf   :  { %1010 = vmatmul.mubr.bf16.vlgmr.msra.gmra.mrb[4].mxu0 %v5020_v16  ;;  %1051 = vmatmul.mubr.bf16.vlgmr.msra.gmra.mrb[4].mxu1 %v5020_v16  ;;  %v4317_v16 = vld [vmem:[#allocation9 + $0x48] ss:$16 sps:$4 sm:$0xff]  }
  0xe0   :  { %2942 = vmatpush1.bf16.msra.mxu0 %v4302_v10  ;;  %3106 = vmatpush1.bf16.msra.mxu1 %v4305_v11 }
  0xe1   :  { %2943 = vmatprep.subr.bf16.mxu0 %v4310_v12  ;;  %3107 = vmatprep.subr.bf16.mxu1 %v4313_v13 }
  0xe4   :  { %2944 = vmatpush1.bf16.msra.mxu0 %v4308_v14  ;;  %3108 = vmatpush1.bf16.msra.mxu1 %v4311_v15 }
  0xe5   :  { %2945 = vmatprep.subr.bf16.mxu0 %v4316_v17  ;;  %3109 = vmatprep.subr.bf16.mxu1 %v4319_v18 }
  0xe8   :  { %2946 = vmatpush1.bf16.msra.mxu0 %v4314_v19  ;;  %3110 = vmatpush1.bf16.msra.mxu1 %v4317_v16 }
  0xe9   :  { %2947 = vmatprep.subr.bf16.mxu0 %v4322_v20  ;;  %3111 = vmatprep.subr.bf16.mxu1 %v4325_v21 }
  0xec   :  { %2948 = vmatpush1.bf16.msra.mxu0 %v4320_v22  ;;  %3112 = vmatpush1.bf16.msra.mxu1 %v4323_v23 }
  0xed   :  { %2949 = vmatprep.subr.bf16.mxu0 %v4328_v24  ;;  %3113 = vmatprep.subr.bf16.mxu1 %v4331_v25  ;;  %v4400_v25 = vld [vmem:[#allocation9 + $0x204] ss:$16 sps:$4 sm:$0xff]  }
  0xf0   :  { %2950 = vmatpush1.bf16.msra.mxu0 %v4326_v58  ;;  %3114 = vmatpush1.bf16.msra.mxu1 %v4329_v26  ;;  %v4403_v58 = vld [vmem:[#allocation9 + $0x20c] ss:$16 sps:$4 sm:$0xff]  }
  0xf1   :  { %2951 = vmatprep.subr.bf16.mxu0 %v4334_v27  ;;  %3115 = vmatprep.subr.bf16.mxu1 %v4337_v28 }
  0xf4   :  { %2952 = vmatpush1.bf16.msra.mxu0 %v4332_v29  ;;  %3116 = vmatpush1.bf16.msra.mxu1 %v4335_v30 }
  0xf5   :  { %2953 = vmatprep.subr.bf16.mxu0 %v4340_v31  ;;  %3117 = vmatprep.subr.bf16.mxu1 %v4343_v32 }
  0xf8   :  { %2954 = vmatpush1.bf16.msra.mxu0 %v4338_v33  ;;  %3118 = vmatpush1.bf16.msra.mxu1 %v4341_v34 }
  0xf9   :  { %2955 = vmatprep.subr.bf16.mxu0 %v4346_v35  ;;  %3119 = vmatprep.subr.bf16.mxu1 %v4349_v36 }
  0xfc   :  { %2956 = vmatpush1.bf16.msra.mxu0 %v4344_v37  ;;  %3120 = vmatpush1.bf16.msra.mxu1 %v4347_v38 }
  0xfd   :  { %2957 = vmatprep.subr.bf16.mxu0 %v4352_v39  ;;  %3121 = vmatprep.subr.bf16.mxu1 %v4355_v40 }
 0x100   :  { %2958 = vmatpush1.bf16.msra.mxu0 %v4350_v41  ;;  %3122 = vmatpush1.bf16.msra.mxu1 %v4353_v42 }
 0x101   :  { %2959 = vmatprep.subr.bf16.mxu0 %v4358_v43  ;;  %3123 = vmatprep.subr.bf16.mxu1 %v4361_v62 }
 0x104   :  { %2960 = vmatpush1.bf16.msra.mxu0 %v4356_v44  ;;  %3124 = vmatpush1.bf16.msra.mxu1 %v4359_v45 }
 0x105   :  { %2961 = vmatprep.subr.bf16.mxu0 %v4364_v46  ;;  %3125 = vmatprep.subr.bf16.mxu1 %v4367_v47 }
 0x108   :  { %2962 = vmatpush1.bf16.msra.mxu0 %v4362_v48  ;;  %3126 = vmatpush1.bf16.msra.mxu1 %v4365_v49 }
 0x109   :  { %2963 = vmatprep.subr.bf16.mxu0 %v4370_v50  ;;  %3127 = vmatprep.subr.bf16.mxu1 %v4373_v51 }
 0x10c   :  { %2964 = vmatpush1.bf16.msra.mxu0 %v4368_v52  ;;  %3128 = vmatpush1.bf16.msra.mxu1 %v4371_v53 }
 0x10d   :  { %2965 = vmatprep.subr.bf16.mxu0 %v4376_v54  ;;  %3129 = vmatprep.subr.bf16.mxu1 %v4379_v55 }
 0x110   :  { %2966 = vmatpush1.bf16.msra.mxu0 %v4374_v56  ;;  %3130 = vmatpush1.bf16.msra.mxu1 %v4377_v57 }
 0x111   :  { %2967 = vmatprep.subr.bf16.mxu0 %v4382_v59  ;;  %3131 = vmatprep.subr.bf16.mxu1 %v4385_v60 }
 0x114   :  { %2968 = vmatpush1.bf16.msra.mxu0 %v4380_v61  ;;  %3132 = vmatpush1.bf16.msra.mxu1 %v4383_v63 }
 0x115   :  { %2969 = vmatprep.subr.bf16.mxu0 %v4388_v0  ;;  %3133 = vmatprep.subr.bf16.mxu1 %v4391_v1 }
 0x118   :  { %2970 = vmatpush1.bf16.msra.mxu0 %v4386_v2  ;;  %3134 = vmatpush1.bf16.msra.mxu1 %v4389_v3 }
 0x119   :  { %2971 = vmatprep.subr.bf16.mxu0 %v4394_v5  ;;  %3135 = vmatprep.subr.bf16.mxu1 %v4397_v8 }
 0x11c   :  { %2972 = vmatpush1.bf16.msra.mxu0 %v4392_v4  ;;  %3136 = vmatpush1.bf16.msra.mxu1 %v4395_v7 }
 0x11d   :  { %2982 = vmatprep.subr.bf16.mxu0 %v4400_v25  ;;  %3146 = vmatprep.subr.bf16.mxu1 %v4403_v58 }
 0x172   :  { %v929_v6 = vpop.f32.mrb[0].mxu0  ;;  %v970_v10 = vpop.f32.mrb[0].mxu1 }
 0x173   :  { %v1088_v9 = vrot.slane %v929_v6, 4  ;;  %v931_v11 = vpop.f32.mrb[1].mxu0  ;;  %v1100_v12 = vrot.slane %v970_v10, 4  ;;  %v972_v14 = vpop.f32.mrb[1].mxu1 }
 0x174   :  { %v1094_v13 = vrot.slane %v931_v11, 4  ;;  %v933_v15 = vpop.f32.mrb[2].mxu0  ;;  %v1106_v18 = vrot.slane %v972_v14, 4  ;;  %v974_v19 = vpop.f32.mrb[2].mxu1 }
 0x175   :  { %v1089_v17 = vadd.f32 %v1088_v9, %v929_v6  ;;  %v934_v16 = vpop.f32.mrb[3].mxu0  ;;  %v1101_v20 = vadd.f32 %v1100_v12, %v970_v10  ;;  %v975_v22 = vpop.f32.mrb[3].mxu1 }
 0x176   :  { %v1095_v21 = vadd.f32 %v1094_v13, %v931_v11  ;;  %v1107_v24 = vadd.f32 %v1106_v18, %v972_v14  ;;  %v4898_v22 = vmov 1966171168  }
 0x177   :  { %v1090_v23 = vrot.slane %v1089_v17, 2  ;;  %v1102_v26 = vrot.slane %v1101_v20, 2 }
 0x178   :  { %v1096_v27 = vrot.slane %v1095_v21, 2  ;;  %v1108_v29 = vrot.slane %v1107_v24, 2 }
 0x179   :  { %v1091_v28 = vadd.f32 %v1090_v23, %v1089_v17  ;;  %v1103_v30 = vadd.f32 %v1102_v26, %v1101_v20  ;;  %v1245_v23 = vunpack.c.l.s4 %v4898_v22 }
 0x17a   :  { %v1097_v31 = vadd.f32 %v1096_v27, %v1095_v21  ;;  %v1109_v33 = vadd.f32 %v1108_v29, %v1107_v24  ;;  %v1247_v24 = vlaneseq }
 0x17b   :  { %v1092_v32 = vrot.slane %v1091_v28, 1  ;;  %v1104_v34 = vrot.slane %v1103_v30, 1  ;;  %v1246_v25 = vunpack.c.0.s8 %v1245_v23 }
 0x17c   :  { %v1098_v35 = vrot.slane %v1097_v31, 1  ;;  %v1110_v37 = vrot.slane %v1109_v33, 1  ;;  %v5044_v58 = vshrl.u32 %v1247_v24, 7 }
 0x17d   :  { %v1093_v36 = vadd.f32 %v1092_v32, %v1091_v28  ;;  %v1105_v38 = vadd.f32 %v1104_v34, %v1103_v30 }
 0x17e   :  { %v1099_v39 = vadd.f32 %v1098_v35, %v1097_v31  ;;  %v1111_v41 = vadd.f32 %v1110_v37, %v1109_v33  ;;  %v5047_v28 = vsub.s32 %v1246_v25, %v5044_v58 }
 0x17f   :  { %v1136_v40 = vmul.f32 0.125, %v1093_v36  ;;  %v1138_v42 = vmul.f32 0.125, %v1105_v38 }
 0x180   :  { %v1137_v43 = vmul.f32 0.125, %v1099_v39  ;;  %v1139_v44 = vmul.f32 0.125, %v1111_v41 }
 0x181   :  { %v5028_v62 = vsub.f32 %v929_v6, %v1136_v40  ;;  %v5030_v45 = vsub.f32 %v970_v10, %v1138_v42 }
 0x182   :  { %v5032_v46 = vsub.f32 %v931_v11, %v1137_v43  ;;  %v5036_v48 = vsub.f32 %v972_v14, %v1139_v44 }
 0x183   :  { %v1152_v47 = vmul.f32 %v5028_v62, %v5028_v62  ;;  %v1154_v49 = vmul.f32 %v5030_v45, %v5030_v45 }
 0x184   :  { %v1153_v50 = vmul.f32 %v5032_v46, %v5032_v46  ;;  %v1155_v52 = vmul.f32 %v5036_v48, %v5036_v48 }
 0x185   :  { %v1160_v51 = vrot.slane %v1152_v47, 4  ;;  %v1172_v53 = vrot.slane %v1154_v49, 4 }
 0x186   :  { %v1166_v54 = vrot.slane %v1153_v50, 4  ;;  %v1178_v56 = vrot.slane %v1155_v52, 4 }
 0x187   :  { %v1161_v55 = vadd.f32 %v1160_v51, %v1152_v47  ;;  %v1173_v57 = vadd.f32 %v1172_v53, %v1154_v49 }
 0x188   :  { %v1167_v59 = vadd.f32 %v1166_v54, %v1153_v50  ;;  %v1179_v61 = vadd.f32 %v1178_v56, %v1155_v52 }
 0x189   :  { %v1162_v60 = vrot.slane %v1161_v55, 2  ;;  %v1174_v63 = vrot.slane %v1173_v57, 2 }
 0x18a   :  { %v1168_v0 = vrot.slane %v1167_v59, 2  ;;  %v1180_v2 = vrot.slane %v1179_v61, 2 }
 0x18b   :  { %v1163_v1 = vadd.f32 %v1162_v60, %v1161_v55  ;;  %v1175_v3 = vadd.f32 %v1174_v63, %v1173_v57 }
 0x18c   :  { %v1169_v4 = vadd.f32 %v1168_v0, %v1167_v59  ;;  %v1181_v6 = vadd.f32 %v1180_v2, %v1179_v61 }
 0x18d   :  { %v1164_v5 = vrot.slane %v1163_v1, 1  ;;  %v1176_v7 = vrot.slane %v1175_v3, 1 }
 0x18e   :  { %v1170_v8 = vrot.slane %v1169_v4, 1  ;;  %v1182_v10 = vrot.slane %v1181_v6, 1 }
 0x18f   :  { %v1165_v9 = vadd.f32 %v1164_v5, %v1163_v1  ;;  %v1177_v11 = vadd.f32 %v1176_v7, %v1175_v3 }
 0x190   :  { %v1171_v12 = vadd.f32 %v1170_v8, %v1169_v4  ;;  %v1183_v14 = vadd.f32 %v1182_v10, %v1181_v6 }
 0x191   :  { %v1208_v13 = vmul.f32 0.125, %v1165_v9  ;;  %v1210_v15 = vmul.f32 0.125, %v1177_v11 }
 0x192   :  { %v1209_v17 = vmul.f32 0.125, %v1171_v12  ;;  %v1211_v19 = vmul.f32 0.125, %v1183_v14 }
 0x193   :  { %v1216_v18 = vadd.f32 1e-05, %v1208_v13  ;;  %v1218_v16 = vadd.f32 1e-05, %v1210_v15 }
 0x194   :  { %v1217_v20 = vadd.f32 1e-05, %v1209_v17  ;;  %v1219_v21 = vadd.f32 1e-05, %v1211_v19 }
 0x195   :  { %4718 = vrsqrt.f32 %v1216_v18 }
 0x196   :  { %4720 = vrsqrt.f32 %v1218_v16 }
 0x197   :  { %4722 = vrsqrt.f32 %v1217_v20 }
 0x198   :  { %4724 = vrsqrt.f32 %v1219_v21 }
 0x19f   :  { %v4719_v26 = vpop.eup %4718 }
 0x1a0   :  { %v4721_v27 = vpop.eup %4720 }
 0x1a1   :  { %v4723_v29 = vpop.eup %4722 }
 0x1a2   :  { %v4725_v30 = vpop.eup %4724  ;;  %v1240_v31 = vcombine.low %v4719_v26, %v4723_v29 }
 0x1a3   :  { %v1241_v32 = vcombine.low %v4721_v27, %v4725_v30 }
 0x1a4   :  { %v5050_v33 = vrot.slane %v1240_v31, %v5047_v28 }
 0x1a5   :  { %v5053_v34 = vrot.slane %v1241_v32, %v5047_v28 }
 0x1a7   :  { %v1272_v35 = vcombine.low %v5050_v33, %v5053_v34  ;;  %v5094_v33 = vsub.s32 2, %v5044_v58 }
 0x1b2   :  { %v1011_v36 = vpop.f32.mrb[4].mxu0  ;;  %v1052_v38 = vpop.f32.mrb[4].mxu1 }
 0x1b3   :  { %v1112_v37 = vrot.slane %v1011_v36, 4  ;;  %v1013_v39 = vpop.f32.mrb[5].mxu0  ;;  %v1124_v40 = vrot.slane %v1052_v38, 4  ;;  %v1054_v42 = vpop.f32.mrb[5].mxu1 }
 0x1b4   :  { %v1118_v41 = vrot.slane %v1013_v39, 4  ;;  %v1015_v43 = vpop.f32.mrb[6].mxu0  ;;  %v1130_v47 = vrot.slane %v1054_v42, 4  ;;  %v1056_v49 = vpop.f32.mrb[6].mxu1 }
 0x1b5   :  { %v1113_v44 = vadd.f32 %v1112_v37, %v1011_v36  ;;  %v1016_v50 = vpop.f32.mrb[7].mxu0  ;;  %v1125_v51 = vadd.f32 %v1124_v40, %v1052_v38  ;;  %v1057_v53 = vpop.f32.mrb[7].mxu1 }
 0x1b6   :  { %v1119_v52 = vadd.f32 %v1118_v41, %v1013_v39  ;;  %v1131_v55 = vadd.f32 %v1130_v47, %v1054_v42 }
 0x1b7   :  { %v1114_v54 = vrot.slane %v1113_v44, 2  ;;  %v1126_v56 = vrot.slane %v1125_v51, 2 }
 0x1b8   :  { %v1120_v57 = vrot.slane %v1119_v52, 2  ;;  %v1132_v60 = vrot.slane %v1131_v55, 2 }
 0x1b9   :  { %v1115_v59 = vadd.f32 %v1114_v54, %v1113_v44  ;;  %v1127_v61 = vadd.f32 %v1126_v56, %v1125_v51 }
 0x1ba   :  { %v1121_v63 = vadd.f32 %v1120_v57, %v1119_v52  ;;  %v1133_v1 = vadd.f32 %v1132_v60, %v1131_v55 }
 0x1bb   :  { %v1116_v0 = vrot.slane %v1115_v59, 1  ;;  %v1128_v2 = vrot.slane %v1127_v61, 1 }
 0x1bc   :  { %v1122_v3 = vrot.slane %v1121_v63, 1  ;;  %v1134_v5 = vrot.slane %v1133_v1, 1 }
 0x1bd   :  { %v1117_v4 = vadd.f32 %v1116_v0, %v1115_v59  ;;  %v1129_v6 = vadd.f32 %v1128_v2, %v1127_v61 }
 0x1be   :  { %v1123_v7 = vadd.f32 %v1122_v3, %v1121_v63  ;;  %v1135_v9 = vadd.f32 %v1134_v5, %v1133_v1 }
 0x1bf   :  { %v1140_v8 = vmul.f32 0.125, %v1117_v4  ;;  %v1142_v10 = vmul.f32 0.125, %v1129_v6 }
 0x1c0   :  { %v1141_v11 = vmul.f32 0.125, %v1123_v7  ;;  %v1143_v13 = vmul.f32 0.125, %v1135_v9  ;;  %v1280_v7 = vrot.slane %v1272_v35, %v5047_v28  ;;  %v1087_v9 = vld [vmem:[%s5180_s3] sm:$0xff]  ;;  %v1314_v35 = vsub.s32 5, %v5044_v58 }
 0x1c1   :  { %v5057_v12 = vsub.f32 %v1011_v36, %v1140_v8  ;;  %v5059_v14 = vsub.f32 %v1052_v38, %v1142_v10  ;;  %v1086_v10 = vld [vmem:[#allocation8] sm:$0xff] }
 0x1c2   :  { %v5061_v15 = vsub.f32 %v1013_v39, %v1141_v11  ;;  %v5065_v18 = vsub.f32 %v1054_v42, %v1143_v13  ;;  %v1322_v11 = vsub.s32 7, %v5044_v58  ;;  %v5085_v13 = vsub.s32 1, %v5044_v58 }
 0x1c3   :  { %v1156_v17 = vmul.f32 %v5057_v12, %v5057_v12  ;;  %v1158_v19 = vmul.f32 %v5059_v14, %v5059_v14 }
 0x1c4   :  { %v1157_v16 = vmul.f32 %v5061_v15, %v5061_v15  ;;  %v1159_v21 = vmul.f32 %v5065_v18, %v5065_v18  ;;  %v1348_v34 = vrot.slane %v1087_v9, %v5085_v13 }
 0x1c5   :  { %v1184_v20 = vrot.slane %v1156_v17, 4  ;;  %v1196_v22 = vrot.slane %v1158_v19, 4 }
 0x1c6   :  { %v1190_v23 = vrot.slane %v1157_v16, 4  ;;  %v1202_v25 = vrot.slane %v1159_v21, 4 }
 0x1c7   :  { %v1185_v24 = vadd.f32 %v1184_v20, %v1156_v17  ;;  %v1197_v26 = vadd.f32 %v1196_v22, %v1158_v19  ;;  %v5088_v19 = vsub.s32 0, %v5044_v58  ;;  %v1310_v20 = vsub.s32 4, %v5044_v58 }
 0x1c8   :  { %v1191_v27 = vadd.f32 %v1190_v23, %v1157_v16  ;;  %v1203_v30 = vadd.f32 %v1202_v25, %v1159_v21  ;;  %v5091_v16 = vsub.s32 3, %v5044_v58  ;;  %v1318_v21 = vsub.s32 6, %v5044_v58 }
 0x1c9   :  { %v1186_v29 = vrot.slane %v1185_v24, 2  ;;  %v1198_v31 = vrot.slane %v1197_v26, 2  ;;  %v1344_v23 = vrot.slane %v1087_v9, %v5088_v19  ;;  %v1352_v25 = vrot.slane %v1087_v9, %v5094_v33 }
 0x1ca   :  { %v1192_v32 = vrot.slane %v1191_v27, 2  ;;  %v1204_v37 = vrot.slane %v1203_v30, 2 }
 0x1cb   :  { %v1187_v36 = vadd.f32 %v1186_v29, %v1185_v24  ;;  %v1199_v38 = vadd.f32 %v1198_v31, %v1197_v26  ;;  %v1356_v24 = vrot.slane %v1087_v9, %v5091_v16  ;;  %v1364_v26 = vrot.slane %v1087_v9, %v1314_v35 }
 0x1cc   :  { %v1193_v39 = vadd.f32 %v1192_v32, %v1191_v27  ;;  %v1205_v41 = vadd.f32 %v1204_v37, %v1203_v30  ;;  %v1360_v27 = vrot.slane %v1087_v9, %v1310_v20  ;;  %v1372_v29 = vrot.slane %v1087_v9, %v1322_v11 }
 0x1cd   :  { %v1188_v40 = vrot.slane %v1187_v36, 1  ;;  %v1200_v42 = vrot.slane %v1199_v38, 1  ;;  %v1368_v30 = vrot.slane %v1087_v9, %v1318_v21  ;;  %v4419_v9 = vld [vmem:[#allocation9 + $0x268] ss:$16 sps:$4 sm:$0xff]  }
 0x1ce   :  { %v1194_v43 = vrot.slane %v1193_v39, 1  ;;  %v1206_v47 = vrot.slane %v1205_v41, 1 }
 0x1cf   :  { %v1189_v44 = vadd.f32 %v1188_v40, %v1187_v36  ;;  %v1201_v49 = vadd.f32 %v1200_v42, %v1199_v38 }
 0x1d0   :  { %v1195_v50 = vadd.f32 %v1194_v43, %v1193_v39  ;;  %v1207_v52 = vadd.f32 %v1206_v47, %v1205_v41 }
 0x1d1   :  { %v1212_v51 = vmul.f32 0.125, %v1189_v44  ;;  %v1214_v53 = vmul.f32 0.125, %v1201_v49 }
 0x1d2   :  { %v1213_v54 = vmul.f32 0.125, %v1195_v50  ;;  %v1215_v56 = vmul.f32 0.125, %v1207_v52 }
 0x1d3   :  { %v1220_v55 = vadd.f32 1e-05, %v1212_v51  ;;  %v1222_v57 = vadd.f32 1e-05, %v1214_v53 }
 0x1d4   :  { %v1221_v59 = vadd.f32 1e-05, %v1213_v54  ;;  %v1223_v60 = vadd.f32 1e-05, %v1215_v56 }
 0x1d5   :  { %4726 = vrsqrt.f32 %v1220_v55 }
 0x1d6   :  { %4728 = vrsqrt.f32 %v1222_v57 }
 0x1d7   :  { %4730 = vrsqrt.f32 %v1221_v59  ;;  %v4401_v59 = vld [vmem:[#allocation9 + $0x208] ss:$16 sps:$4 sm:$0xff]  }
 0x1d8   :  { %4732 = vrsqrt.f32 %v1223_v60  ;;  %v4406_v60 = vld [vmem:[#allocation9 + $0x224] ss:$16 sps:$4 sm:$0xff]  }
 0x1df   :  { %v4727_v61 = vpop.eup %4726 }
 0x1e0   :  { %v4729_v63 = vpop.eup %4728 }
 0x1e1   :  { %v4731_v0 = vpop.eup %4730 }
 0x1e2   :  { %v4733_v1 = vpop.eup %4732  ;;  %v1242_v2 = vcombine.low %v4727_v61, %v4731_v0  ;;  %v4409_v61 = vld [vmem:[#allocation9 + $0x22c] ss:$16 sps:$4 sm:$0xff]   ;;  %v4404_v0 = vld [vmem:[#allocation9 + $0x220] ss:$16 sps:$4 sm:$0xff]  }
 0x1e3   :  { %v1243_v3 = vcombine.low %v4729_v63, %v4733_v1  ;;  %v4407_v1 = vld [vmem:[#allocation9 + $0x228] ss:$16 sps:$4 sm:$0xff]  }
 0x1e4   :  { %v1264_v4 = vrot.slane %v1242_v2, %v5047_v28  ;;  %v4412_v2 = vld [vmem:[#allocation9 + $0x244] ss:$16 sps:$4 sm:$0xff]  }
 0x1e5   :  { %v1271_v5 = vrot.slane %v1243_v3, %v5047_v28  ;;  %v4415_v3 = vld [vmem:[#allocation9 + $0x24c] ss:$16 sps:$4 sm:$0xff]  }
 0x1e7   :  { %v1273_v6 = vcombine.low %v1264_v4, %v1271_v5  ;;  %v4410_v4 = vld [vmem:[#allocation9 + $0x240] ss:$16 sps:$4 sm:$0xff]   ;;  %v4413_v5 = vld [vmem:[#allocation9 + $0x248] ss:$16 sps:$4 sm:$0xff]  }
 0x1e9   :  { %v1287_v8 = vrot.slane %v1273_v6, %v5047_v28  ;;  %v4418_v6 = vld [vmem:[#allocation9 + $0x264] ss:$16 sps:$4 sm:$0xff]  }
 0x1eb   :  { %v1288_v17 = vcombine.low %v1280_v7, %v1287_v8  ;;  %v4421_v7 = vld [vmem:[#allocation9 + $0x26c] ss:$16 sps:$4 sm:$0xff]   ;;  %v4416_v8 = vld [vmem:[#allocation9 + $0x260] ss:$16 sps:$4 sm:$0xff]  }
 0x1ed   :  { %v1290_v22 = vmul.f32 %v1288_v17, %v1086_v10  ;;  %v4424_v10 = vld [vmem:[#allocation9 + $0x284] ss:$16 sps:$4 sm:$0xff]   ;;  %v4422_v17 = vld [vmem:[#allocation9 + $0x280] ss:$16 sps:$4 sm:$0xff]  }
 0x1ef   :  { %v1323_v31 = vrot.slane %v1290_v22, %v1322_v11  ;;  %v1299_v32 = vrot.slane %v1290_v22, %v5085_v13  ;;  %v1295_v36 = vrot.slane %v1290_v22, %v5088_v19  ;;  %v1307_v37 = vrot.slane %v1290_v22, %v5091_v16  ;;  %v4427_v11 = vld [vmem:[#allocation9 + $0x28c] ss:$16 sps:$4 sm:$0xff]  }
 0x1f0   :  { %v1303_v58 = vrot.slane %v1290_v22, %v5094_v33  ;;  %v1315_v38 = vrot.slane %v1290_v22, %v1314_v35  ;;  %v1311_v39 = vrot.slane %v1290_v22, %v1310_v20  ;;  %v1319_v40 = vrot.slane %v1290_v22, %v1318_v21  ;;  %v4430_v35 = vld [vmem:[#allocation9 + $0x2a4] ss:$16 sps:$4 sm:$0xff]   ;;  %v4433_v20 = vld [vmem:[#allocation9 + $0x2ac] ss:$16 sps:$4 sm:$0xff]   ;;  %v4428_v21 = vld [vmem:[#allocation9 + $0x2a0] ss:$16 sps:$4 sm:$0xff]  }
 0x1f1   :  { %v1339_v41 = vmul.f32 %v1323_v31, %v5065_v18  ;;  %v1333_v42 = vmul.f32 %v1299_v32, %v5032_v46  ;;  %v1332_v43 = vmul.f32 %v1295_v36, %v5028_v62  ;;  %v1335_v44 = vmul.f32 %v1307_v37, %v5036_v48  ;;  %v4431_v22 = vld [vmem:[#allocation9 + $0x2a8] ss:$16 sps:$4 sm:$0xff]   ;;  %v4448_v32 = vld [vmem:[#allocation9 + $0x304] ss:$16 sps:$4 sm:$0xff]   ;;  %v4451_v36 = vld [vmem:[#allocation9 + $0x30c] ss:$16 sps:$4 sm:$0xff]  }
 0x1f2   :  { %v1334_v47 = vmul.f32 %v1303_v58, %v5030_v45  ;;  %v1337_v49 = vmul.f32 %v1315_v38, %v5061_v15  ;;  %v1336_v50 = vmul.f32 %v1311_v39, %v5057_v12  ;;  %v1338_v51 = vmul.f32 %v1319_v40, %v5059_v14  ;;  %v4398_v12 = vld [vmem:[#allocation9 + $0x200] ss:$16 sps:$4 sm:$0xff]   ;;  %v4443_v31 = vld [vmem:[#allocation9 + $0x2e8] ss:$16 sps:$4 sm:$0xff]   ;;  %v4454_v38 = vld [vmem:[#allocation9 + $0x324] ss:$16 sps:$4 sm:$0xff]  }
 0x1f3   :  { %v1382_v52 = vadd.f32 %v1348_v34, %v1333_v42  ;;  %v1381_v53 = vadd.f32 %v1344_v23, %v1332_v43  ;;  %v1384_v54 = vadd.f32 %v1356_v24, %v1335_v44  ;;  %v5115_v55 = vadd.f32 %v1372_v29, %v1339_v41  ;;  %v4425_v34 = vld [vmem:[#allocation9 + $0x288] ss:$16 sps:$4 sm:$0xff]   ;;  %v4436_v23 = vld [vmem:[#allocation9 + $0x2c4] ss:$16 sps:$4 sm:$0xff]   ;;  %v4439_v24 = vld [vmem:[#allocation9 + $0x2cc] ss:$16 sps:$4 sm:$0xff]  }
 0x1f4   :  { %v5117_v18 = vadd.f32 %v1352_v25, %v1334_v47  ;;  %v5119_v46 = vadd.f32 %v1364_v26, %v1337_v49  ;;  %v5121_v62 = vadd.f32 %v1360_v27, %v1336_v50  ;;  %v5123_v48 = vadd.f32 %v1368_v30, %v1338_v51  ;;  %v4434_v25 = vld [vmem:[#allocation9 + $0x2c0] ss:$16 sps:$4 sm:$0xff]   ;;  %v4437_v26 = vld [vmem:[#allocation9 + $0x2c8] ss:$16 sps:$4 sm:$0xff]   ;;  %v4442_v27 = vld [vmem:[#allocation9 + $0x2e4] ss:$16 sps:$4 sm:$0xff]  }
 0x1f5   :  { %v1390_v45 = vmax.f32 %v1382_v52, 0.0  ;;  %v1389_v56 = vmax.f32 %v1381_v53, 0.0  ;;  %v1392_v15 = vmax.f32 %v1384_v54, 0.0  ;;  %v4445_v29 = vld [vmem:[#allocation9 + $0x2ec] ss:$16 sps:$4 sm:$0xff]  }
 0x1f6   :  { %v4440_v30 = vld [vmem:[#allocation9 + $0x2e0] ss:$16 sps:$4 sm:$0xff]   ;;  %v4449_v58 = vld [vmem:[#allocation9 + $0x308] ss:$16 sps:$4 sm:$0xff]   ;;  %v4457_v39 = vld [vmem:[#allocation9 + $0x32c] ss:$16 sps:$4 sm:$0xff]  }
 0x1f7   :  { %v1398_v57 = vpack.c.bf16 %v1390_v45, %v1390_v45  ;;  %v1397_v14 = vpack.c.bf16 %v1389_v56, %v1389_v56  ;;  %v1400_v63 = vpack.c.bf16 %v1392_v15, %v1392_v15  ;;  %v4446_v37 = vld [vmem:[#allocation9 + $0x300] ss:$16 sps:$4 sm:$0xff]   ;;  %v4455_v41 = vld [vmem:[#allocation9 + $0x328] ss:$16 sps:$4 sm:$0xff]   ;;  %v4460_v42 = vld [vmem:[#allocation9 + $0x344] ss:$16 sps:$4 sm:$0xff]  }
 0x1f8   :  { %v4452_v40 = vld [vmem:[#allocation9 + $0x320] ss:$16 sps:$4 sm:$0xff]   ;;  %v4463_v43 = vld [vmem:[#allocation9 + $0x34c] ss:$16 sps:$4 sm:$0xff]   ;;  %v4461_v47 = vld [vmem:[#allocation9 + $0x348] ss:$16 sps:$4 sm:$0xff]  }
 0x1f9   :  { %2973 = vmatprep.mubr.bf16.mxu0 %v1398_v57  ;;  %3137 = vmatprep.mubr.bf16.mxu1 %v1398_v57  ;;  %v4458_v44 = vld [vmem:[#allocation9 + $0x340] ss:$16 sps:$4 sm:$0xff]   ;;  %v4466_v49 = vld [vmem:[#allocation9 + $0x364] ss:$16 sps:$4 sm:$0xff]   ;;  %v4469_v50 = vld [vmem:[#allocation9 + $0x36c] ss:$16 sps:$4 sm:$0xff]  }
 0x1fa   :  { %2974 = vmatmul.mubr.bf16.vlgmr.msra.gmra.mrb[8].mxu0 %v1397_v14  ;;  %3138 = vmatmul.mubr.bf16.vlgmr.msra.gmra.mrb[8].mxu1 %v1397_v14  ;;  %v4464_v51 = vld [vmem:[#allocation9 + $0x360] ss:$16 sps:$4 sm:$0xff]   ;;  %v4467_v52 = vld [vmem:[#allocation9 + $0x368] ss:$16 sps:$4 sm:$0xff]   ;;  %v4472_v53 = vld [vmem:[#allocation9 + $0x384] ss:$16 sps:$4 sm:$0xff]  }
 0x1fb   :  { %2983 = vmatpush1.bf16.msra.mxu0 %v4398_v12  ;;  %3147 = vmatpush1.bf16.msra.mxu1 %v4401_v59  ;;  %v4475_v54 = vld [vmem:[#allocation9 + $0x38c] ss:$16 sps:$4 sm:$0xff]   ;;  %v4470_v45 = vld [vmem:[#allocation9 + $0x380] ss:$16 sps:$4 sm:$0xff]   ;;  %v4473_v56 = vld [vmem:[#allocation9 + $0x388] ss:$16 sps:$4 sm:$0xff]  }
 0x1fc   :  { %3014 = vmatprep.mubr.bf16.mxu0 %v1400_v63  ;;  %3178 = vmatprep.mubr.bf16.mxu1 %v1400_v63  ;;  %v4478_v15 = vld [vmem:[#allocation9 + $0x3a4] ss:$16 sps:$4 sm:$0xff]   ;;  %v4481_v57 = vld [vmem:[#allocation9 + $0x3ac] ss:$16 sps:$4 sm:$0xff]   ;;  %v4476_v12 = vld [vmem:[#allocation9 + $0x3a0] ss:$16 sps:$4 sm:$0xff]  }
 0x1fd   :  { %2984 = vmatprep.subr.bf16.mxu0 %v4406_v60  ;;  %3148 = vmatprep.subr.bf16.mxu1 %v4409_v61  ;;  %v4479_v59 = vld [vmem:[#allocation9 + $0x3a8] ss:$16 sps:$4 sm:$0xff]   ;;  %v4484_v14 = vld [vmem:[#allocation9 + $0x3c4] ss:$16 sps:$4 sm:$0xff]   ;;  %v4487_v60 = vld [vmem:[#allocation9 + $0x3cc] ss:$16 sps:$4 sm:$0xff]  }
 0x1fe   :  { %v4482_v61 = vld [vmem:[#allocation9 + $0x3c0] ss:$16 sps:$4 sm:$0xff]   ;;  %v4485_v63 = vld [vmem:[#allocation9 + $0x3c8] ss:$16 sps:$4 sm:$0xff]  }
 0x1ff   :  { %2985 = vmatpush1.bf16.msra.mxu0 %v4404_v0  ;;  %3149 = vmatpush1.bf16.msra.mxu1 %v4407_v1  ;;  %v4490_v0 = vld [vmem:[#allocation9 + $0x3e4] ss:$16 sps:$4 sm:$0xff]   ;;  %v4493_v1 = vld [vmem:[#allocation9 + $0x3ec] ss:$16 sps:$4 sm:$0xff]  }
 0x200   :  { %2986 = vmatprep.subr.bf16.mxu0 %v4412_v2  ;;  %3150 = vmatprep.subr.bf16.mxu1 %v4415_v3  ;;  %v4488_v2 = vld [vmem:[#allocation9 + $0x3e0] ss:$16 sps:$4 sm:$0xff]   ;;  %v4491_v3 = vld [vmem:[#allocation9 + $0x3e8] ss:$16 sps:$4 sm:$0xff]  }
 0x203   :  { %2987 = vmatpush1.bf16.msra.mxu0 %v4410_v4  ;;  %3151 = vmatpush1.bf16.msra.mxu1 %v4413_v5  ;;  %v1391_v4 = vmax.f32 %v5117_v18, 0.0  ;;  %v4496_v5 = vld [vmem:[#allocation9 + $0x404] ss:$16 sps:$4 sm:$0xff]   ;;  %v4503_v18 = vld [vmem:[#allocation9 + $0x428] ss:$16 sps:$4 sm:$0xff]  }
 0x204   :  { %2988 = vmatprep.subr.bf16.mxu0 %v4418_v6  ;;  %3152 = vmatprep.subr.bf16.mxu1 %v4421_v7  ;;  %v4499_v6 = vld [vmem:[#allocation9 + $0x40c] ss:$16 sps:$4 sm:$0xff]   ;;  %v1394_v7 = vmax.f32 %v5119_v46, 0.0 }
 0x205   :  { %v4511_v46 = vld [vmem:[#allocation9 + $0x44c] ss:$16 sps:$4 sm:$0xff]  }
 0x207   :  { %2989 = vmatpush1.bf16.msra.mxu0 %v4416_v8  ;;  %3153 = vmatpush1.bf16.msra.mxu1 %v4419_v9  ;;  %v4494_v8 = vld [vmem:[#allocation9 + $0x400] ss:$16 sps:$4 sm:$0xff]   ;;  %v1399_v9 = vpack.c.bf16 %v1391_v4, %v1391_v4  ;;  %v4574_v4 = vld [vmem:[#allocation9 + $0x5a4] ss:$16 sps:$4 sm:$0xff]  }
 0x208   :  { %2990 = vmatprep.subr.bf16.mxu0 %v4424_v10  ;;  %3154 = vmatprep.subr.bf16.mxu1 %v4427_v11  ;;  %v4497_v10 = vld [vmem:[#allocation9 + $0x408] ss:$16 sps:$4 sm:$0xff]   ;;  %v1402_v11 = vpack.c.bf16 %v1394_v7, %v1394_v7 }
 0x209   :  { %v4575_v7 = vld [vmem:[#allocation9 + $0x5a8] ss:$16 sps:$4 sm:$0xff]  }
 0x20b   :  { %2991 = vmatpush1.bf16.msra.mxu0 %v4422_v17  ;;  %3155 = vmatpush1.bf16.msra.mxu1 %v4425_v34  ;;  %v4502_v17 = vld [vmem:[#allocation9 + $0x424] ss:$16 sps:$4 sm:$0xff]   ;;  %v4505_v34 = vld [vmem:[#allocation9 + $0x42c] ss:$16 sps:$4 sm:$0xff]  }
 0x20c   :  { %2992 = vmatprep.subr.bf16.mxu0 %v4430_v35  ;;  %3156 = vmatprep.subr.bf16.mxu1 %v4433_v20  ;;  %v4500_v35 = vld [vmem:[#allocation9 + $0x420] ss:$16 sps:$4 sm:$0xff]   ;;  %v4508_v20 = vld [vmem:[#allocation9 + $0x444] ss:$16 sps:$4 sm:$0xff]  }
 0x20f   :  { %2993 = vmatpush1.bf16.msra.mxu0 %v4428_v21  ;;  %3157 = vmatpush1.bf16.msra.mxu1 %v4431_v22  ;;  %v4506_v21 = vld [vmem:[#allocation9 + $0x440] ss:$16 sps:$4 sm:$0xff]   ;;  %v4509_v22 = vld [vmem:[#allocation9 + $0x448] ss:$16 sps:$4 sm:$0xff]  }
 0x210   :  { %2994 = vmatprep.subr.bf16.mxu0 %v4436_v23  ;;  %3158 = vmatprep.subr.bf16.mxu1 %v4439_v24  ;;  %v4514_v23 = vld [vmem:[#allocation9 + $0x464] ss:$16 sps:$4 sm:$0xff]   ;;  %v4517_v24 = vld [vmem:[#allocation9 + $0x46c] ss:$16 sps:$4 sm:$0xff]  }
 0x213   :  { %2995 = vmatpush1.bf16.msra.mxu0 %v4434_v25  ;;  %3159 = vmatpush1.bf16.msra.mxu1 %v4437_v26  ;;  %v4512_v25 = vld [vmem:[#allocation9 + $0x460] ss:$16 sps:$4 sm:$0xff]   ;;  %v4515_v26 = vld [vmem:[#allocation9 + $0x468] ss:$16 sps:$4 sm:$0xff]  }
 0x214   :  { %2996 = vmatprep.subr.bf16.mxu0 %v4442_v27  ;;  %3160 = vmatprep.subr.bf16.mxu1 %v4445_v29  ;;  %v4520_v27 = vld [vmem:[#allocation9 + $0x484] ss:$16 sps:$4 sm:$0xff]   ;;  %v4523_v29 = vld [vmem:[#allocation9 + $0x48c] ss:$16 sps:$4 sm:$0xff]  }
 0x217   :  { %2997 = vmatpush1.bf16.msra.mxu0 %v4440_v30  ;;  %3161 = vmatpush1.bf16.msra.mxu1 %v4443_v31  ;;  %v4518_v30 = vld [vmem:[#allocation9 + $0x480] ss:$16 sps:$4 sm:$0xff]   ;;  %v4521_v31 = vld [vmem:[#allocation9 + $0x488] ss:$16 sps:$4 sm:$0xff]  }
 0x218   :  { %2998 = vmatprep.subr.bf16.mxu0 %v4448_v32  ;;  %3162 = vmatprep.subr.bf16.mxu1 %v4451_v36  ;;  %v4526_v32 = vld [vmem:[#allocation9 + $0x4a4] ss:$16 sps:$4 sm:$0xff]   ;;  %v4529_v36 = vld [vmem:[#allocation9 + $0x4ac] ss:$16 sps:$4 sm:$0xff]  }
 0x21b   :  { %2999 = vmatpush1.bf16.msra.mxu0 %v4446_v37  ;;  %3163 = vmatpush1.bf16.msra.mxu1 %v4449_v58  ;;  %v4524_v37 = vld [vmem:[#allocation9 + $0x4a0] ss:$16 sps:$4 sm:$0xff]   ;;  %v4527_v58 = vld [vmem:[#allocation9 + $0x4a8] ss:$16 sps:$4 sm:$0xff]  }
 0x21c   :  { %3000 = vmatprep.subr.bf16.mxu0 %v4454_v38  ;;  %3164 = vmatprep.subr.bf16.mxu1 %v4457_v39  ;;  %v4532_v38 = vld [vmem:[#allocation9 + $0x4c4] ss:$16 sps:$4 sm:$0xff]   ;;  %v4535_v39 = vld [vmem:[#allocation9 + $0x4cc] ss:$16 sps:$4 sm:$0xff]  }
 0x21f   :  { %3001 = vmatpush1.bf16.msra.mxu0 %v4452_v40  ;;  %3165 = vmatpush1.bf16.msra.mxu1 %v4455_v41  ;;  %v4530_v40 = vld [vmem:[#allocation9 + $0x4c0] ss:$16 sps:$4 sm:$0xff]   ;;  %v4533_v41 = vld [vmem:[#allocation9 + $0x4c8] ss:$16 sps:$4 sm:$0xff]  }
 0x220   :  { %3002 = vmatprep.subr.bf16.mxu0 %v4460_v42  ;;  %3166 = vmatprep.subr.bf16.mxu1 %v4463_v43  ;;  %v4538_v42 = vld [vmem:[#allocation9 + $0x4e4] ss:$16 sps:$4 sm:$0xff]   ;;  %v4541_v43 = vld [vmem:[#allocation9 + $0x4ec] ss:$16 sps:$4 sm:$0xff]  }
 0x223   :  { %3003 = vmatpush1.bf16.msra.mxu0 %v4458_v44  ;;  %3167 = vmatpush1.bf16.msra.mxu1 %v4461_v47  ;;  %v4536_v44 = vld [vmem:[#allocation9 + $0x4e0] ss:$16 sps:$4 sm:$0xff]   ;;  %v4539_v47 = vld [vmem:[#allocation9 + $0x4e8] ss:$16 sps:$4 sm:$0xff]  }
 0x224   :  { %3004 = vmatprep.subr.bf16.mxu0 %v4466_v49  ;;  %3168 = vmatprep.subr.bf16.mxu1 %v4469_v50  ;;  %v4544_v49 = vld [vmem:[#allocation9 + $0x504] ss:$16 sps:$4 sm:$0xff]   ;;  %v4547_v50 = vld [vmem:[#allocation9 + $0x50c] ss:$16 sps:$4 sm:$0xff]  }
 0x227   :  { %3005 = vmatpush1.bf16.msra.mxu0 %v4464_v51  ;;  %3169 = vmatpush1.bf16.msra.mxu1 %v4467_v52  ;;  %v4542_v51 = vld [vmem:[#allocation9 + $0x500] ss:$16 sps:$4 sm:$0xff]   ;;  %v4545_v52 = vld [vmem:[#allocation9 + $0x508] ss:$16 sps:$4 sm:$0xff]  }
 0x228   :  { %3006 = vmatprep.subr.bf16.mxu0 %v4472_v53  ;;  %3170 = vmatprep.subr.bf16.mxu1 %v4475_v54  ;;  %v4550_v53 = vld [vmem:[#allocation9 + $0x524] ss:$16 sps:$4 sm:$0xff]   ;;  %v4553_v54 = vld [vmem:[#allocation9 + $0x52c] ss:$16 sps:$4 sm:$0xff]  }
 0x22b   :  { %3007 = vmatpush1.bf16.msra.mxu0 %v4470_v45  ;;  %3171 = vmatpush1.bf16.msra.mxu1 %v4473_v56  ;;  %v4548_v45 = vld [vmem:[#allocation9 + $0x520] ss:$16 sps:$4 sm:$0xff]   ;;  %v4551_v56 = vld [vmem:[#allocation9 + $0x528] ss:$16 sps:$4 sm:$0xff]  }
 0x22c   :  { %3008 = vmatprep.subr.bf16.mxu0 %v4478_v15  ;;  %3172 = vmatprep.subr.bf16.mxu1 %v4481_v57  ;;  %v4556_v15 = vld [vmem:[#allocation9 + $0x544] ss:$16 sps:$4 sm:$0xff]   ;;  %v4559_v57 = vld [vmem:[#allocation9 + $0x54c] ss:$16 sps:$4 sm:$0xff]  }
 0x22f   :  { %3009 = vmatpush1.bf16.msra.mxu0 %v4476_v12  ;;  %3173 = vmatpush1.bf16.msra.mxu1 %v4479_v59  ;;  %v4554_v12 = vld [vmem:[#allocation9 + $0x540] ss:$16 sps:$4 sm:$0xff]   ;;  %v4557_v59 = vld [vmem:[#allocation9 + $0x548] ss:$16 sps:$4 sm:$0xff]  }
 0x230   :  { %3010 = vmatprep.subr.bf16.mxu0 %v4484_v14  ;;  %3174 = vmatprep.subr.bf16.mxu1 %v4487_v60  ;;  %v4562_v14 = vld [vmem:[#allocation9 + $0x564] ss:$16 sps:$4 sm:$0xff]   ;;  %v4565_v60 = vld [vmem:[#allocation9 + $0x56c] ss:$16 sps:$4 sm:$0xff]  }
 0x233   :  { %3011 = vmatpush1.bf16.msra.mxu0 %v4482_v61  ;;  %3175 = vmatpush1.bf16.msra.mxu1 %v4485_v63  ;;  %v4560_v61 = vld [vmem:[#allocation9 + $0x560] ss:$16 sps:$4 sm:$0xff]   ;;  %v4563_v63 = vld [vmem:[#allocation9 + $0x568] ss:$16 sps:$4 sm:$0xff]  }
 0x234   :  { %3012 = vmatprep.subr.bf16.mxu0 %v4490_v0  ;;  %3176 = vmatprep.subr.bf16.mxu1 %v4493_v1  ;;  %v4568_v0 = vld [vmem:[#allocation9 + $0x584] ss:$16 sps:$4 sm:$0xff]   ;;  %v4571_v1 = vld [vmem:[#allocation9 + $0x58c] ss:$16 sps:$4 sm:$0xff]  }
 0x237   :  { %3013 = vmatpush1.bf16.msra.mxu0 %v4488_v2  ;;  %3177 = vmatpush1.bf16.msra.mxu1 %v4491_v3  ;;  %v4566_v2 = vld [vmem:[#allocation9 + $0x580] ss:$16 sps:$4 sm:$0xff]   ;;  %v4569_v3 = vld [vmem:[#allocation9 + $0x588] ss:$16 sps:$4 sm:$0xff]  }
 0x238   :  { %3023 = vmatprep.subr.bf16.mxu0 %v4496_v5  ;;  %3187 = vmatprep.subr.bf16.mxu1 %v4499_v6  ;;  %v4577_v5 = vld [vmem:[#allocation9 + $0x5ac] ss:$16 sps:$4 sm:$0xff]   ;;  %v4572_v6 = vld [vmem:[#allocation9 + $0x5a0] ss:$16 sps:$4 sm:$0xff]  }
 0x23a   :  { %3015 = vmatmul.mubr.bf16.vlgmr.msra.gmra.mrb[8].mxu0 %v1399_v9  ;;  %3179 = vmatmul.mubr.bf16.vlgmr.msra.gmra.mrb[8].mxu1 %v1399_v9  ;;  %v4583_v9 = vld [vmem:[#allocation9 + $0x5cc] ss:$16 sps:$4 sm:$0xff]  }
 0x23b   :  { %3024 = vmatpush1.bf16.msra.mxu0 %v4494_v8  ;;  %3055 = vmatprep.mubr.bf16.mxu0 %v1402_v11  ;;  %v4580_v8 = vld [vmem:[#allocation9 + $0x5c4] ss:$16 sps:$4 sm:$0xff]  }
 0x23c   :  { %3188 = vmatpush1.bf16.msra.mxu1 %v4497_v10  ;;  %3219 = vmatprep.mubr.bf16.mxu1 %v1402_v11  ;;  %v4578_v10 = vld [vmem:[#allocation9 + $0x5c0] ss:$16 sps:$4 sm:$0xff]   ;;  %v4581_v11 = vld [vmem:[#allocation9 + $0x5c8] ss:$16 sps:$4 sm:$0xff]  }
 0x23d   :  { %3025 = vmatprep.subr.bf16.mxu0 %v4502_v17  ;;  %3189 = vmatprep.subr.bf16.mxu1 %v4505_v34  ;;  %v4586_v17 = vld [vmem:[#allocation9 + $0x5e4] ss:$16 sps:$4 sm:$0xff]   ;;  %v4589_v34 = vld [vmem:[#allocation9 + $0x5ec] ss:$16 sps:$4 sm:$0xff]  }
 0x23f   :  { %3026 = vmatpush1.bf16.msra.mxu0 %v4500_v35  ;;  %v4584_v35 = vld [vmem:[#allocation9 + $0x5e0] ss:$16 sps:$4 sm:$0xff]  }
 0x240   :  { %3190 = vmatpush1.bf16.msra.mxu1 %v4503_v18  ;;  %3027 = vmatprep.subr.bf16.mxu0 %v4508_v20  ;;  %v4587_v18 = vld [vmem:[#allocation9 + $0x5e8] ss:$16 sps:$4 sm:$0xff]   ;;  %v1393_v20 = vmax.f32 %v5121_v62, 0.0 }
 0x241   :  { %3191 = vmatprep.subr.bf16.mxu1 %v4511_v46  ;;  %v4592_v46 = vld [vmem:[#allocation9 + $0x604] ss:$16 sps:$4 sm:$0xff]   ;;  %v4599_v62 = vld [vmem:[#allocation9 + $0x628] ss:$16 sps:$4 sm:$0xff]  }
 0x243   :  { %3028 = vmatpush1.bf16.msra.mxu0 %v4506_v21  ;;  %v4595_v21 = vld [vmem:[#allocation9 + $0x60c] ss:$16 sps:$4 sm:$0xff]  }
 0x244   :  { %3192 = vmatpush1.bf16.msra.mxu1 %v4509_v22  ;;  %3029 = vmatprep.subr.bf16.mxu0 %v4514_v23  ;;  %v1396_v22 = vmax.f32 %v5115_v55, 0.0  ;;  %v4590_v23 = vld [vmem:[#allocation9 + $0x600] ss:$16 sps:$4 sm:$0xff]   ;;  %v4607_v55 = vld [vmem:[#allocation9 + $0x64c] ss:$16 sps:$4 sm:$0xff]  }
 0x245   :  { %3193 = vmatprep.subr.bf16.mxu1 %v4517_v24  ;;  %v1401_v24 = vpack.c.bf16 %v1393_v20, %v1393_v20  ;;  %v4668_v20 = vld [vmem:[#allocation9 + $0x7a0] ss:$16 sps:$4 sm:$0xff]  }
 0x247   :  { %3030 = vmatpush1.bf16.msra.mxu0 %v4512_v25  ;;  %v4593_v25 = vld [vmem:[#allocation9 + $0x608] ss:$16 sps:$4 sm:$0xff]  }
 0x248   :  { %3194 = vmatpush1.bf16.msra.mxu1 %v4515_v26  ;;  %3031 = vmatprep.subr.bf16.mxu0 %v4520_v27  ;;  %v4598_v26 = vld [vmem:[#allocation9 + $0x624] ss:$16 sps:$4 sm:$0xff]   ;;  %v1404_v27 = vpack.c.bf16 %v1396_v22, %v1396_v22  ;;  %v4679_v22 = vld [vmem:[#allocation9 + $0x7cc] ss:$16 sps:$4 sm:$0xff]  }
 0x249   :  { %3195 = vmatprep.subr.bf16.mxu1 %v4523_v29  ;;  %v4601_v29 = vld [vmem:[#allocation9 + $0x62c] ss:$16 sps:$4 sm:$0xff]  }
 0x24b   :  { %3032 = vmatpush1.bf16.msra.mxu0 %v4518_v30  ;;  %v4596_v30 = vld [vmem:[#allocation9 + $0x620] ss:$16 sps:$4 sm:$0xff]  }
 0x24c   :  { %3196 = vmatpush1.bf16.msra.mxu1 %v4521_v31  ;;  %3033 = vmatprep.subr.bf16.mxu0 %v4526_v32  ;;  %v4604_v31 = vld [vmem:[#allocation9 + $0x644] ss:$16 sps:$4 sm:$0xff]   ;;  %v4602_v32 = vld [vmem:[#allocation9 + $0x640] ss:$16 sps:$4 sm:$0xff]  }
 0x24d   :  { %3197 = vmatprep.subr.bf16.mxu1 %v4529_v36  ;;  %v4605_v36 = vld [vmem:[#allocation9 + $0x648] ss:$16 sps:$4 sm:$0xff]  }
 0x24f   :  { %3034 = vmatpush1.bf16.msra.mxu0 %v4524_v37  ;;  %v4610_v37 = vld [vmem:[#allocation9 + $0x664] ss:$16 sps:$4 sm:$0xff]  }
 0x250   :  { %3198 = vmatpush1.bf16.msra.mxu1 %v4527_v58  ;;  %3035 = vmatprep.subr.bf16.mxu0 %v4532_v38  ;;  %v4613_v58 = vld [vmem:[#allocation9 + $0x66c] ss:$16 sps:$4 sm:$0xff]   ;;  %v4608_v38 = vld [vmem:[#allocation9 + $0x660] ss:$16 sps:$4 sm:$0xff]  }
 0x251   :  { %3199 = vmatprep.subr.bf16.mxu1 %v4535_v39  ;;  %v4611_v39 = vld [vmem:[#allocation9 + $0x668] ss:$16 sps:$4 sm:$0xff]  }
 0x253   :  { %3036 = vmatpush1.bf16.msra.mxu0 %v4530_v40  ;;  %v4616_v40 = vld [vmem:[#allocation9 + $0x684] ss:$16 sps:$4 sm:$0xff]  }
 0x254   :  { %3200 = vmatpush1.bf16.msra.mxu1 %v4533_v41  ;;  %3037 = vmatprep.subr.bf16.mxu0 %v4538_v42  ;;  %v4619_v41 = vld [vmem:[#allocation9 + $0x68c] ss:$16 sps:$4 sm:$0xff]   ;;  %v4614_v42 = vld [vmem:[#allocation9 + $0x680] ss:$16 sps:$4 sm:$0xff]  }
 0x255   :  { %3201 = vmatprep.subr.bf16.mxu1 %v4541_v43  ;;  %v4617_v43 = vld [vmem:[#allocation9 + $0x688] ss:$16 sps:$4 sm:$0xff]  }
 0x257   :  { %3038 = vmatpush1.bf16.msra.mxu0 %v4536_v44  ;;  %v4622_v44 = vld [vmem:[#allocation9 + $0x6a4] ss:$16 sps:$4 sm:$0xff]  }
 0x258   :  { %3202 = vmatpush1.bf16.msra.mxu1 %v4539_v47  ;;  %3039 = vmatprep.subr.bf16.mxu0 %v4544_v49  ;;  %v4625_v47 = vld [vmem:[#allocation9 + $0x6ac] ss:$16 sps:$4 sm:$0xff]   ;;  %v4620_v49 = vld [vmem:[#allocation9 + $0x6a0] ss:$16 sps:$4 sm:$0xff]  }
 0x259   :  { %3203 = vmatprep.subr.bf16.mxu1 %v4547_v50  ;;  %v4623_v50 = vld [vmem:[#allocation9 + $0x6a8] ss:$16 sps:$4 sm:$0xff]  }
 0x25b   :  { %3040 = vmatpush1.bf16.msra.mxu0 %v4542_v51  ;;  %v4628_v51 = vld [vmem:[#allocation9 + $0x6c4] ss:$16 sps:$4 sm:$0xff]  }
 0x25c   :  { %3204 = vmatpush1.bf16.msra.mxu1 %v4545_v52  ;;  %3041 = vmatprep.subr.bf16.mxu0 %v4550_v53  ;;  %v4631_v52 = vld [vmem:[#allocation9 + $0x6cc] ss:$16 sps:$4 sm:$0xff]   ;;  %v4626_v53 = vld [vmem:[#allocation9 + $0x6c0] ss:$16 sps:$4 sm:$0xff]  }
 0x25d   :  { %3205 = vmatprep.subr.bf16.mxu1 %v4553_v54  ;;  %v4629_v54 = vld [vmem:[#allocation9 + $0x6c8] ss:$16 sps:$4 sm:$0xff]  }
 0x25f   :  { %3042 = vmatpush1.bf16.msra.mxu0 %v4548_v45  ;;  %v4634_v45 = vld [vmem:[#allocation9 + $0x6e4] ss:$16 sps:$4 sm:$0xff]  }
 0x260   :  { %3206 = vmatpush1.bf16.msra.mxu1 %v4551_v56  ;;  %3043 = vmatprep.subr.bf16.mxu0 %v4556_v15  ;;  %v4637_v56 = vld [vmem:[#allocation9 + $0x6ec] ss:$16 sps:$4 sm:$0xff]   ;;  %v4632_v15 = vld [vmem:[#allocation9 + $0x6e0] ss:$16 sps:$4 sm:$0xff]  }
 0x261   :  { %3207 = vmatprep.subr.bf16.mxu1 %v4559_v57  ;;  %v4635_v57 = vld [vmem:[#allocation9 + $0x6e8] ss:$16 sps:$4 sm:$0xff]  }
 0x263   :  { %3044 = vmatpush1.bf16.msra.mxu0 %v4554_v12  ;;  %v4640_v12 = vld [vmem:[#allocation9 + $0x704] ss:$16 sps:$4 sm:$0xff]  }
 0x264   :  { %3208 = vmatpush1.bf16.msra.mxu1 %v4557_v59  ;;  %3045 = vmatprep.subr.bf16.mxu0 %v4562_v14  ;;  %v4643_v59 = vld [vmem:[#allocation9 + $0x70c] ss:$16 sps:$4 sm:$0xff]   ;;  %v4638_v14 = vld [vmem:[#allocation9 + $0x700] ss:$16 sps:$4 sm:$0xff]  }
 0x265   :  { %3209 = vmatprep.subr.bf16.mxu1 %v4565_v60  ;;  %v4641_v60 = vld [vmem:[#allocation9 + $0x708] ss:$16 sps:$4 sm:$0xff]  }
 0x267   :  { %3046 = vmatpush1.bf16.msra.mxu0 %v4560_v61  ;;  %v4646_v61 = vld [vmem:[#allocation9 + $0x724] ss:$16 sps:$4 sm:$0xff]  }
 0x268   :  { %3210 = vmatpush1.bf16.msra.mxu1 %v4563_v63  ;;  %3047 = vmatprep.subr.bf16.mxu0 %v4568_v0  ;;  %v4649_v63 = vld [vmem:[#allocation9 + $0x72c] ss:$16 sps:$4 sm:$0xff]   ;;  %v4644_v0 = vld [vmem:[#allocation9 + $0x720] ss:$16 sps:$4 sm:$0xff]  }
 0x269   :  { %3211 = vmatprep.subr.bf16.mxu1 %v4571_v1  ;;  %v4647_v1 = vld [vmem:[#allocation9 + $0x728] ss:$16 sps:$4 sm:$0xff]  }
 0x26b   :  { %3048 = vmatpush1.bf16.msra.mxu0 %v4566_v2  ;;  %v4652_v2 = vld [vmem:[#allocation9 + $0x744] ss:$16 sps:$4 sm:$0xff]  }
 0x26c   :  { %3212 = vmatpush1.bf16.msra.mxu1 %v4569_v3  ;;  %3049 = vmatprep.subr.bf16.mxu0 %v4574_v4  ;;  %v4655_v3 = vld [vmem:[#allocation9 + $0x74c] ss:$16 sps:$4 sm:$0xff]   ;;  %v4650_v4 = vld [vmem:[#allocation9 + $0x740] ss:$16 sps:$4 sm:$0xff]  }
 0x26d   :  { %3213 = vmatprep.subr.bf16.mxu1 %v4577_v5  ;;  %v4653_v5 = vld [vmem:[#allocation9 + $0x748] ss:$16 sps:$4 sm:$0xff]  }
 0x26f   :  { %3050 = vmatpush1.bf16.msra.mxu0 %v4572_v6  ;;  %v4658_v6 = vld [vmem:[#allocation9 + $0x764] ss:$16 sps:$4 sm:$0xff]  }
 0x270   :  { %3214 = vmatpush1.bf16.msra.mxu1 %v4575_v7  ;;  %3051 = vmatprep.subr.bf16.mxu0 %v4580_v8  ;;  %v4661_v7 = vld [vmem:[#allocation9 + $0x76c] ss:$16 sps:$4 sm:$0xff]   ;;  %v4656_v8 = vld [vmem:[#allocation9 + $0x760] ss:$16 sps:$4 sm:$0xff]  }
 0x271   :  { %3215 = vmatprep.subr.bf16.mxu1 %v4583_v9  ;;  %v4659_v9 = vld [vmem:[#allocation9 + $0x768] ss:$16 sps:$4 sm:$0xff]  }
 0x273   :  { %3052 = vmatpush1.bf16.msra.mxu0 %v4578_v10  ;;  %v4664_v10 = vld [vmem:[#allocation9 + $0x784] ss:$16 sps:$4 sm:$0xff]  }
 0x274   :  { %3216 = vmatpush1.bf16.msra.mxu1 %v4581_v11  ;;  %3053 = vmatprep.subr.bf16.mxu0 %v4586_v17  ;;  %v4667_v11 = vld [vmem:[#allocation9 + $0x78c] ss:$16 sps:$4 sm:$0xff]   ;;  %v4662_v17 = vld [vmem:[#allocation9 + $0x780] ss:$16 sps:$4 sm:$0xff]  }
 0x275   :  { %3217 = vmatprep.subr.bf16.mxu1 %v4589_v34  ;;  %v4665_v34 = vld [vmem:[#allocation9 + $0x788] ss:$16 sps:$4 sm:$0xff]  }
 0x277   :  { %3054 = vmatpush1.bf16.msra.mxu0 %v4584_v35  ;;  %v4670_v35 = vld [vmem:[#allocation9 + $0x7a4] ss:$16 sps:$4 sm:$0xff]  }
 0x278   :  { %3218 = vmatpush1.bf16.msra.mxu1 %v4587_v18  ;;  %3064 = vmatprep.subr.bf16.mxu0 %v4592_v46  ;;  %v4673_v18 = vld [vmem:[#allocation9 + $0x7ac] ss:$16 sps:$4 sm:$0xff]   ;;  %v4671_v46 = vld [vmem:[#allocation9 + $0x7a8] ss:$16 sps:$4 sm:$0xff]  }
 0x279   :  { %3228 = vmatprep.subr.bf16.mxu1 %v4595_v21  ;;  %v4676_v21 = vld [vmem:[#allocation9 + $0x7c4] ss:$16 sps:$4 sm:$0xff]  }
 0x27a   :  { %3056 = vmatmul.mubr.bf16.vlgmr.msra.gmra.mrb[8].mxu0 %v1401_v24 }
 0x27b   :  { %3220 = vmatmul.mubr.bf16.vlgmr.msra.gmra.mrb[8].mxu1 %v1401_v24  ;;  %3065 = vmatpush1.bf16.msra.mxu0 %v4590_v23  ;;  %v4674_v23 = vld [vmem:[#allocation9 + $0x7c0] ss:$16 sps:$4 sm:$0xff]   ;;  %v4677_v24 = vld [vmem:[#allocation9 + $0x7c8] ss:$16 sps:$4 sm:$0xff]  }
 0x27c   :  { %3096 = vmatprep.mubr.bf16.mxu0 %v1404_v27  ;;  %3229 = vmatpush1.bf16.msra.mxu1 %v4593_v25  ;;  %v4682_v25 = vld [vmem:[#allocation9 + $0x7e4] ss:$16 sps:$4 sm:$0xff]  }
 0x27d   :  { %3260 = vmatprep.mubr.bf16.mxu1 %v1404_v27  ;;  %3066 = vmatprep.subr.bf16.mxu0 %v4598_v26  ;;  %v4685_v26 = vld [vmem:[#allocation9 + $0x7ec] ss:$16 sps:$4 sm:$0xff]   ;;  %v4680_v27 = vld [vmem:[#allocation9 + $0x7e0] ss:$16 sps:$4 sm:$0xff]  }
 0x27e   :  { %3230 = vmatprep.subr.bf16.mxu1 %v4601_v29  ;;  %v4683_v29 = vld [vmem:[#allocation9 + $0x7e8] ss:$16 sps:$4 sm:$0xff]  }
 0x27f   :  { %3067 = vmatpush1.bf16.msra.mxu0 %v4596_v30  ;;  %v1395_v30 = vmax.f32 %v5123_v48, 0.0  ;;  %v4694_v48 = vld [vmem:[#allocation11 + $0x50] sm:$0xff]  }
 0x280   :  { %3231 = vmatpush1.bf16.msra.mxu1 %v4599_v62  ;;  %3068 = vmatprep.subr.bf16.mxu0 %v4604_v31  ;;  %v4686_v31 = vld [vmem:[#allocation11 + $0x40] sm:$0xff]  }
 0x281   :  { %3232 = vmatprep.subr.bf16.mxu1 %v4607_v55  ;;  %v1403_v62 = vpack.c.bf16 %v1395_v30, %v1395_v30  ;;  %v4687_v55 = vld [vmem:[#allocation11 + $0xc0] sm:$0xff]  }
 0x283   :  { %3069 = vmatpush1.bf16.msra.mxu0 %v4602_v32  ;;  %v4688_v32 = vld [vmem:[#allocation11] sm:$0xff]  }
 0x284   :  { %3233 = vmatpush1.bf16.msra.mxu1 %v4605_v36  ;;  %3070 = vmatprep.subr.bf16.mxu0 %v4610_v37  ;;  %v4689_v36 = vld [vmem:[#allocation11 + $0x80] sm:$0xff]   ;;  %v4690_v37 = vld [vmem:[#allocation11 + $0x48] sm:$0xff]  }
 0x285   :  { %3234 = vmatprep.subr.bf16.mxu1 %v4613_v58  ;;  %v4691_v58 = vld [vmem:[#allocation11 + $0xc8] sm:$0xff]  }
 0x287   :  { %3071 = vmatpush1.bf16.msra.mxu0 %v4608_v38  ;;  %v4692_v38 = vld [vmem:[#allocation11 + $0x8] sm:$0xff]  }
 0x288   :  { %3235 = vmatpush1.bf16.msra.mxu1 %v4611_v39  ;;  %3072 = vmatprep.subr.bf16.mxu0 %v4616_v40  ;;  %v4693_v39 = vld [vmem:[#allocation11 + $0x88] sm:$0xff]   ;;  %v4695_v40 = vld [vmem:[#allocation11 + $0xd0] sm:$0xff]  }
 0x289   :  { %3236 = vmatprep.subr.bf16.mxu1 %v4619_v41  ;;  %v4696_v41 = vld [vmem:[#allocation11 + $0x10] sm:$0xff]  }
 0x28b   :  { %3073 = vmatpush1.bf16.msra.mxu0 %v4614_v42  ;;  %v4697_v42 = vld [vmem:[#allocation11 + $0x90] sm:$0xff]  }
 0x28c   :  { %3237 = vmatpush1.bf16.msra.mxu1 %v4617_v43  ;;  %3074 = vmatprep.subr.bf16.mxu0 %v4622_v44  ;;  %v4698_v43 = vld [vmem:[#allocation11 + $0x58] sm:$0xff]  }
 0x28d   :  { %3238 = vmatprep.subr.bf16.mxu1 %v4625_v47  ;;  %v4699_v44 = vld [vmem:[#allocation11 + $0xd8] sm:$0xff]  }
 0x28e   :  { %v4700_v47 = vld [vmem:[#allocation11 + $0x18] sm:$0xff]  }
 0x28f   :  { %3075 = vmatpush1.bf16.msra.mxu0 %v4620_v49  ;;  %v4701_v49 = vld [vmem:[#allocation11 + $0x98] sm:$0xff]  }
 0x290   :  { %3239 = vmatpush1.bf16.msra.mxu1 %v4623_v50  ;;  %3076 = vmatprep.subr.bf16.mxu0 %v4628_v51  ;;  %v4702_v50 = vld [vmem:[#allocation11 + $0x60] sm:$0xff]  }
 0x291   :  { %3240 = vmatprep.subr.bf16.mxu1 %v4631_v52  ;;  %v4703_v51 = vld [vmem:[#allocation11 + $0xe0] sm:$0xff]  }
 0x292   :  { %v4704_v52 = vld [vmem:[#allocation11 + $0x20] sm:$0xff]  }
 0x293   :  { %3077 = vmatpush1.bf16.msra.mxu0 %v4626_v53  ;;  %v4705_v53 = vld [vmem:[#allocation11 + $0xa0] sm:$0xff]  }
 0x294   :  { %3241 = vmatpush1.bf16.msra.mxu1 %v4629_v54  ;;  %3078 = vmatprep.subr.bf16.mxu0 %v4634_v45  ;;  %v4706_v54 = vld [vmem:[#allocation11 + $0x68] sm:$0xff]  }
 0x295   :  { %3242 = vmatprep.subr.bf16.mxu1 %v4637_v56  ;;  %v4707_v45 = vld [vmem:[#allocation11 + $0xe8] sm:$0xff]  }
 0x296   :  { %v4708_v56 = vld [vmem:[#allocation11 + $0x28] sm:$0xff]  }
 0x297   :  { %3079 = vmatpush1.bf16.msra.mxu0 %v4632_v15  ;;  %v4709_v15 = vld [vmem:[#allocation11 + $0xa8] sm:$0xff]  }
 0x298   :  { %3243 = vmatpush1.bf16.msra.mxu1 %v4635_v57  ;;  %3080 = vmatprep.subr.bf16.mxu0 %v4640_v12  ;;  %v4710_v57 = vld [vmem:[#allocation11 + $0x70] sm:$0xff]  }
 0x299   :  { %3244 = vmatprep.subr.bf16.mxu1 %v4643_v59  ;;  %v4711_v12 = vld [vmem:[#allocation11 + $0xf0] sm:$0xff]  }
 0x29a   :  { %v4712_v59 = vld [vmem:[#allocation11 + $0x30] sm:$0xff]  }
 0x29b   :  { %3081 = vmatpush1.bf16.msra.mxu0 %v4638_v14  ;;  %v4713_v14 = vld [vmem:[#allocation11 + $0xb0] sm:$0xff]  }
 0x29c   :  { %3245 = vmatpush1.bf16.msra.mxu1 %v4641_v60  ;;  %3082 = vmatprep.subr.bf16.mxu0 %v4646_v61  ;;  %v4714_v60 = vld [vmem:[#allocation11 + $0x78] sm:$0xff]  }
 0x29d   :  { %3246 = vmatprep.subr.bf16.mxu1 %v4649_v63  ;;  %v4715_v61 = vld [vmem:[#allocation11 + $0xf8] sm:$0xff]  }
 0x29e   :  { %v4716_v63 = vld [vmem:[#allocation11 + $0x38] sm:$0xff]  }
 0x29f   :  { %3083 = vmatpush1.bf16.msra.mxu0 %v4644_v0  ;;  %v4717_v0 = vld [vmem:[#allocation11 + $0xb8] sm:$0xff]  }
 0x2a0   :  { %3247 = vmatpush1.bf16.msra.mxu1 %v4647_v1  ;;  %3084 = vmatprep.subr.bf16.mxu0 %v4652_v2 }
 0x2a1   :  { %3248 = vmatprep.subr.bf16.mxu1 %v4655_v3 }
 0x2a3   :  { %3085 = vmatpush1.bf16.msra.mxu0 %v4650_v4 }
 0x2a4   :  { %3249 = vmatpush1.bf16.msra.mxu1 %v4653_v5  ;;  %3086 = vmatprep.subr.bf16.mxu0 %v4658_v6 }
 0x2a5   :  { %3250 = vmatprep.subr.bf16.mxu1 %v4661_v7 }
 0x2a7   :  { %3087 = vmatpush1.bf16.msra.mxu0 %v4656_v8 }
 0x2a8   :  { %3251 = vmatpush1.bf16.msra.mxu1 %v4659_v9  ;;  %3088 = vmatprep.subr.bf16.mxu0 %v4664_v10 }
 0x2a9   :  { %3252 = vmatprep.subr.bf16.mxu1 %v4667_v11 }
 0x2ab   :  { %3089 = vmatpush1.bf16.msra.mxu0 %v4662_v17 }
 0x2ac   :  { %3253 = vmatpush1.bf16.msra.mxu1 %v4665_v34  ;;  %3090 = vmatprep.subr.bf16.mxu0 %v4670_v35 }
 0x2ad   :  { %3254 = vmatprep.subr.bf16.mxu1 %v4673_v18 }
 0x2af   :  { %3091 = vmatpush1.bf16.msra.mxu0 %v4668_v20 }
 0x2b0   :  { %3255 = vmatpush1.bf16.msra.mxu1 %v4671_v46  ;;  %3092 = vmatprep.subr.bf16.mxu0 %v4676_v21 }
 0x2b1   :  { %3256 = vmatprep.subr.bf16.mxu1 %v4679_v22 }
 0x2b3   :  { %3093 = vmatpush1.bf16.msra.mxu0 %v4674_v23 }
 0x2b4   :  { %3257 = vmatpush1.bf16.msra.mxu1 %v4677_v24  ;;  %3094 = vmatprep.subr.bf16.mxu0 %v4682_v25 }
 0x2b5   :  { %3258 = vmatprep.subr.bf16.mxu1 %v4685_v26 }
 0x2b7   :  { %3095 = vmatpush1.bf16.msra.mxu0 %v4680_v27 }
 0x2b8   :  { %3259 = vmatpush1.bf16.msra.mxu1 %v4683_v29  ;;  %4220 = vmatprep.subr.bf16.mxu0 %v4686_v31 }
 0x2b9   :  { %4242 = vmatprep.subr.bf16.mxu1 %v4687_v55 }
 0x2ba   :  { %3097 = vmatmul.mubr.bf16.vlgmr.msra.gmra.mrb[8].mxu0 %v1403_v62 }
 0x2bb   :  { %3261 = vmatmul.mubr.bf16.vlgmr.msra.gmra.mrb[8].mxu1 %v1403_v62  ;;  %4221 = vmatpush3.bf16.msra.mxu0 %v4688_v32 }
 0x2bc   :  { %4243 = vmatpush3.bf16.msra.mxu1 %v4689_v36  ;;  %4222 = vmatprep.subr.bf16.mxu0 %v4690_v37 }
 0x2bd   :  { %4244 = vmatprep.subr.bf16.mxu1 %v4691_v58 }
 0x2bf   :  { %4223 = vmatpush3.bf16.msra.mxu0 %v4692_v38 }
 0x2c0   :  { %4245 = vmatpush3.bf16.msra.mxu1 %v4693_v39  ;;  %4224 = vmatprep.subr.bf16.mxu0 %v4694_v48 }
 0x2c1   :  { %4246 = vmatprep.subr.bf16.mxu1 %v4695_v40 }
 0x2c3   :  { %4225 = vmatpush3.bf16.msra.mxu0 %v4696_v41 }
 0x2c4   :  { %4247 = vmatpush3.bf16.msra.mxu1 %v4697_v42  ;;  %4226 = vmatprep.subr.bf16.mxu0 %v4698_v43 }
 0x2c5   :  { %4248 = vmatprep.subr.bf16.mxu1 %v4699_v44 }
 0x2c7   :  { %4227 = vmatpush3.bf16.msra.mxu0 %v4700_v47 }
 0x2c8   :  { %4249 = vmatpush3.bf16.msra.mxu1 %v4701_v49  ;;  %4228 = vmatprep.subr.bf16.mxu0 %v4702_v50 }
 0x2c9   :  { %4250 = vmatprep.subr.bf16.mxu1 %v4703_v51 }
 0x2cb   :  { %4229 = vmatpush3.bf16.msra.mxu0 %v4704_v52 }
 0x2cc   :  { %4251 = vmatpush3.bf16.msra.mxu1 %v4705_v53  ;;  %4230 = vmatprep.subr.bf16.mxu0 %v4706_v54 }
 0x2cd   :  { %4252 = vmatprep.subr.bf16.mxu1 %v4707_v45 }
 0x2cf   :  { %4231 = vmatpush3.bf16.msra.mxu0 %v4708_v56 }
 0x2d0   :  { %4253 = vmatpush3.bf16.msra.mxu1 %v4709_v15  ;;  %4232 = vmatprep.subr.bf16.mxu0 %v4710_v57 }
 0x2d1   :  { %4254 = vmatprep.subr.bf16.mxu1 %v4711_v12 }
 0x2d3   :  { %4233 = vmatpush3.bf16.msra.mxu0 %v4712_v59 }
 0x2d4   :  { %4255 = vmatpush3.bf16.msra.mxu1 %v4713_v14  ;;  %4234 = vmatprep.subr.bf16.mxu0 %v4714_v60 }
 0x2d5   :  { %4256 = vmatprep.subr.bf16.mxu1 %v4715_v61 }
 0x2d7   :  { %4235 = vmatpush3.bf16.msra.mxu0 %v4716_v63 }
 0x2d8   :  { %4257 = vmatpush3.bf16.msra.mxu1 %v4717_v0 }
 0x38d   :  { %v3098_v1 = vpop.f32.mrb[8].mxu0 }
 0x38e   :  { %v3271_v2 = vrot.slane %v3098_v1, 4  ;;  %v3262_v3 = vpop.f32.mrb[8].mxu1  ;;  %v3100_v4 = vpop.f32.mrb[9].mxu0 }
 0x38f   :  { %v3283_v5 = vrot.slane %v3262_v3, 4  ;;  %v3277_v6 = vrot.slane %v3100_v4, 4  ;;  %v3264_v7 = vpop.f32.mrb[9].mxu1  ;;  %v3102_v8 = vpop.f32.mrb[10].mxu0 }
 0x390   :  { %v3272_v9 = vadd.f32 %v3271_v2, %v3098_v1  ;;  %v3289_v10 = vrot.slane %v3264_v7, 4  ;;  %v3266_v11 = vpop.f32.mrb[10].mxu1  ;;  %v3103_v17 = vpop.f32.mrb[11].mxu0 }
 0x391   :  { %v3284_v34 = vadd.f32 %v3283_v5, %v3262_v3  ;;  %v3278_v35 = vadd.f32 %v3277_v6, %v3100_v4  ;;  %v3267_v18 = vpop.f32.mrb[11].mxu1 }
 0x392   :  { %v3273_v20 = vrot.slane %v3272_v9, 2  ;;  %v3290_v46 = vadd.f32 %v3289_v10, %v3264_v7 }
 0x393   :  { %v3285_v21 = vrot.slane %v3284_v34, 2  ;;  %v3279_v22 = vrot.slane %v3278_v35, 2 }
 0x394   :  { %v3274_v23 = vadd.f32 %v3273_v20, %v3272_v9  ;;  %v3291_v24 = vrot.slane %v3290_v46, 2 }
 0x395   :  { %v3286_v25 = vadd.f32 %v3285_v21, %v3284_v34  ;;  %v3280_v26 = vadd.f32 %v3279_v22, %v3278_v35 }
 0x396   :  { %v3275_v27 = vrot.slane %v3274_v23, 1  ;;  %v3292_v29 = vadd.f32 %v3291_v24, %v3290_v46 }
 0x397   :  { %v3287_v30 = vrot.slane %v3286_v25, 1  ;;  %v3281_v62 = vrot.slane %v3280_v26, 1 }
 0x398   :  { %v3276_v31 = vadd.f32 %v3275_v27, %v3274_v23  ;;  %v3293_v55 = vrot.slane %v3292_v29, 1 }
 0x399   :  { %v3288_v32 = vadd.f32 %v3287_v30, %v3286_v25  ;;  %v3282_v36 = vadd.f32 %v3281_v62, %v3280_v26  ;;  %v3269_v62 = vld [vmem:[%s5182_s5] sm:$0xf] }
 0x39a   :  { %v3295_v37 = vmul.f32 0.125, %v3276_v31  ;;  %v3294_v58 = vadd.f32 %v3293_v55, %v3292_v29  ;;  %v3270_v55 = vld [vmem:[%s5183_s6] sm:$0xf] }
 0x39b   :  { %v3297_v38 = vmul.f32 0.125, %v3288_v32  ;;  %v3296_v39 = vmul.f32 0.125, %v3282_v36  ;;  %v3406_v36 = vrot.slane %v3270_v55, %v5085_v13 }
 0x39c   :  { %v5130_v48 = vsub.f32 %v3098_v1, %v3295_v37  ;;  %v3298_v40 = vmul.f32 0.125, %v3294_v58  ;;  %v3414_v37 = vrot.slane %v3270_v55, %v5091_v16  ;;  %v3402_v58 = vrot.slane %v3270_v55, %v5088_v19 }
 0x39d   :  { %v5132_v41 = vsub.f32 %v3262_v3, %v3297_v38  ;;  %v5134_v42 = vsub.f32 %v3100_v4, %v3296_v39  ;;  %v3410_v38 = vrot.slane %v3270_v55, %v5094_v33 }
 0x39e   :  { %v3303_v43 = vmul.f32 %v5130_v48, %v5130_v48  ;;  %v3302_v44 = vsub.f32 %v3264_v7, %v3298_v40 }
 0x39f   :  { %v3305_v47 = vmul.f32 %v5132_v41, %v5132_v41  ;;  %v3304_v49 = vmul.f32 %v5134_v42, %v5134_v42 }
 0x3a0   :  { %v3307_v50 = vrot.slane %v3303_v43, 4  ;;  %v3306_v51 = vmul.f32 %v3302_v44, %v3302_v44 }
 0x3a1   :  { %v3319_v52 = vrot.slane %v3305_v47, 4  ;;  %v3313_v53 = vrot.slane %v3304_v49, 4 }
 0x3a2   :  { %v3308_v54 = vadd.f32 %v3307_v50, %v3303_v43  ;;  %v3325_v45 = vrot.slane %v3306_v51, 4 }
 0x3a3   :  { %v3320_v56 = vadd.f32 %v3319_v52, %v3305_v47  ;;  %v3314_v15 = vadd.f32 %v3313_v53, %v3304_v49 }
 0x3a4   :  { %v3309_v57 = vrot.slane %v3308_v54, 2  ;;  %v3326_v12 = vadd.f32 %v3325_v45, %v3306_v51 }
 0x3a5   :  { %v3321_v59 = vrot.slane %v3320_v56, 2  ;;  %v3315_v14 = vrot.slane %v3314_v15, 2 }
 0x3a6   :  { %v3310_v60 = vadd.f32 %v3309_v57, %v3308_v54  ;;  %v3327_v61 = vrot.slane %v3326_v12, 2 }
 0x3a7   :  { %v3322_v63 = vadd.f32 %v3321_v59, %v3320_v56  ;;  %v3316_v0 = vadd.f32 %v3315_v14, %v3314_v15 }
 0x3a8   :  { %v3311_v1 = vrot.slane %v3310_v60, 1  ;;  %v3328_v2 = vadd.f32 %v3327_v61, %v3326_v12 }
 0x3a9   :  { %v3323_v3 = vrot.slane %v3322_v63, 1  ;;  %v3317_v4 = vrot.slane %v3316_v0, 1 }
 0x3aa   :  { %v3312_v5 = vadd.f32 %v3311_v1, %v3310_v60  ;;  %v3329_v6 = vrot.slane %v3328_v2, 1 }
 0x3ab   :  { %v3324_v7 = vadd.f32 %v3323_v3, %v3322_v63  ;;  %v3318_v8 = vadd.f32 %v3317_v4, %v3316_v0 }
 0x3ac   :  { %v3331_v9 = vmul.f32 0.125, %v3312_v5  ;;  %v3330_v10 = vadd.f32 %v3329_v6, %v3328_v2 }
 0x3ad   :  { %v3333_v11 = vmul.f32 0.125, %v3324_v7  ;;  %v3332_v17 = vmul.f32 0.125, %v3318_v8 }
 0x3ae   :  { %v3335_v34 = vadd.f32 1e-05, %v3331_v9  ;;  %v3334_v35 = vmul.f32 0.125, %v3330_v10 }
 0x3af   :  { %v3337_v18 = vadd.f32 1e-05, %v3333_v11  ;;  %v3336_v20 = vadd.f32 1e-05, %v3332_v17 }
 0x3b0   :  { %4734 = vrsqrt.f32 %v3335_v34  ;;  %v3338_v46 = vadd.f32 1e-05, %v3334_v35 }
 0x3b1   :  { %4736 = vrsqrt.f32 %v3337_v18 }
 0x3b2   :  { %4738 = vrsqrt.f32 %v3336_v20 }
 0x3b3   :  { %4740 = vrsqrt.f32 %v3338_v46 }
 0x3ba   :  { %v4735_v21 = vpop.eup %4734 }
 0x3bb   :  { %v4737_v22 = vpop.eup %4736 }
 0x3bc   :  { %v4739_v23 = vpop.eup %4738 }
 0x3bd   :  { %v4741_v24 = vpop.eup %4740  ;;  %v3347_v25 = vcombine.low %v4735_v21, %v4739_v23 }
 0x3be   :  { %v3348_v26 = vcombine.low %v4737_v22, %v4741_v24 }
 0x3bf   :  { %v3355_v27 = vrot.slane %v3347_v25, %v5047_v28 }
 0x3c0   :  { %v3362_v29 = vrot.slane %v3348_v26, %v5047_v28 }
 0x3c2   :  { %v3363_v30 = vcombine.low %v3355_v27, %v3362_v29 }
 0x3c4   :  { %v3370_v31 = vrot.slane %v3363_v30, %v5047_v28 }
 0x3c6   :  { %v3372_v32 = vmul.f32 %v3370_v31, %v3269_v62 }
 0x3c8   :  { %v3389_v39 = vrot.slane %v3372_v32, %v5091_v16  ;;  %v3381_v40 = vrot.slane %v3372_v32, %v5085_v13  ;;  %v3377_v43 = vrot.slane %v3372_v32, %v5088_v19  ;;  %v3385_v28 = vrot.slane %v3372_v32, %v5094_v33 }
 0x3ca   :  { %v3397_v47 = vmul.f32 %v3389_v39, %v3302_v44  ;;  %v3395_v49 = vmul.f32 %v3381_v40, %v5134_v42  ;;  %v3394_v50 = vmul.f32 %v3377_v43, %v5130_v48  ;;  %v3396_v51 = vmul.f32 %v3385_v28, %v5132_v41  ;;  %v4187_v41 = vld [vmem:[%s5185_s8] ss:$0 sm:$0xff]  ;;  %s4899_s8 = smov [#allocation12]  }
 0x3cb   :  { %s3790_s11 = sshll.u32 %s4899_s8, 4  ;;  %s3791_s11 = int_to_ptr.vmem [resolvable:$true] %s3790_s11 }
 0x3cc   :  { %v3420_v52 = vadd.f32 %v3406_v36, %v3395_v49  ;;  %v3422_v53 = vadd.f32 %v3414_v37, %v3397_v47  ;;  %v3419_v54 = vadd.f32 %v3402_v58, %v3394_v50  ;;  %v3421_v45 = vadd.f32 %v3410_v38, %v3396_v51  ;;  %s4856_s12 = scalar_lea.vmem %s3791_s11, 128  ;;  %p4861_p13 = scmp.lt.s32.totalorder %s3791_s11, %s3791_s11 }
 0x3cd   :  { %p4857_p12 = scmp.ne.s32.totalorder %s3791_s11, %s4856_s12  ;;  %p4862_p0 = scmp.lt.s32.totalorder %s4856_s12, %s4856_s12 }
 0x3ce   :  { %v3424_v56 = vmax.f32 %v3420_v52, 0.0  ;;  %v3426_v15 = vmax.f32 %v3422_v53, 0.0  ;;  %v3423_v16 = vmax.f32 %v3419_v54, 0.0  ;;  %v3425_v57 = vmax.f32 %v3421_v45, 0.0 }
 0x3cf   :  { %p4863_p1 = por %p4862_p0, %p4861_p13 }
 0x3d0   :  { %v3428_v13 = vpack.c.bf16 %v3424_v56, %v3424_v56  ;;  %v3430_v12 = vpack.c.bf16 %v3426_v15, %v3426_v15  ;;  %v3427_v19 = vpack.c.bf16 %v3423_v16, %v3423_v16  ;;  %v3429_v59 = vpack.c.bf16 %v3425_v57, %v3425_v57 }
 0x3d1   :  { %p4864_p2 = pnand %p4863_p1, %p4857_p12 }
 0x3d2   :  { %3726 = vmatprep.mubr.bf16.mxu0 %v3428_v13  ;;  %3766 = vmatprep.mubr.bf16.mxu1 %v3430_v12 }
 0x3d3   :  { %3727 = vmatmul.mubr.bf16.vlgmr.msra.gmra.mrb[12].mxu0 %v3427_v19  ;;  %3767 = vmatmul.mubr.bf16.vlgmr.msra.gmra.mrb[12].mxu1 %v3429_v59 }
 0x4a6   :  { %v4236_v33 = vpop.f32.mrb[12].mxu0  ;;  %v4258_v48 = vpop.f32.mrb[12].mxu1 }
 0x4a7   :  { %v4237_v42 = vpop.f32.mrb[13].mxu0  ;;  %v4259_v44 = vpop.f32.mrb[13].mxu1 }
 0x4a8   :  { %v4238_v14 = vadd.f32 %v4237_v42, %v4236_v33  ;;  %v4260_v60 = vadd.f32 %v4259_v44, %v4258_v48  ;;  %v4239_v61 = vpop.f32.mrb[14].mxu0  ;;  %v4261_v63 = vpop.f32.mrb[14].mxu1 }
 0x4a9   :  { %v4240_v0 = vpop.f32.mrb[15].mxu0  ;;  %v4262_v1 = vpop.f32.mrb[15].mxu1 }
 0x4aa   :  { %v3729_v2 = vadd.f32 %v4238_v14, %v4187_v41 }
 0x4ac   :  { %v3769_v3 = vadd.f32 %v4260_v60, %v3729_v2 }
 0x4ae   :  { %3774 = vmax.xlane.f32.xlu0 %v3769_v3 }
 0x53b   :  { %v3775_v4 = vpop.xlane.xlu0 %3774 }
 0x53c   :  { %v3776_v5 = vsub.f32 %v3769_v3, %v3775_v4 }
 0x53e   :  { %v3777_v6 = vmul.f32 1.442695, %v3776_v5 }
 0x540   :  { %4742 = vpow2.f32 %v3777_v6 }
 0x54a   :  { %v4743_v7 = vpop.eup %4742 }
 0x54b   :  { %3779 = vadd.xlane.f32.xlu0 %v4743_v7 }
 0x5d8   :  { %v3780_v8 = vpop.xlane.xlu0 %3779 }
 0x5d9   :  { %4744 = vrcp.f32 %v3780_v8 }
 0x5e3   :  { %v4745_v9 = vpop.eup %4744 }
 0x5e4   :  { %v3782_v10 = vmul.f32 %v4745_v9, %v4743_v7 }
 0x5e6   :  { %3783 = vst [vmem:[#allocation12] sm:$0xff] %v3782_v10 }
 0x5e7   :  { %4867 = shalt.err (!%p4864_p2)
}
 0x5e8   :  { %s4868_s13 = scalar_lea.hbm %s5186_s9, 128 }
 0x5e9   :  { %p4869_p3 = scmp.ne.s32.totalorder %s5186_s9, %s4868_s13  ;;  %p4872_p4 = scmp.lt.u32.totalorder %s4868_s13, %s5186_s9 }
 0x5eb   :  { %p4874_p5 = pnand %p4872_p4, %p4869_p3 }
 0x5ed   :  { %4877 = shalt.err (!%p4874_p5)
}
 0x5ee   :  { %3793 = dma.vmem_to_hbm [thread:$0]  %s3791_s11, 128, %s5186_s9, [#allocation5]  }
 0x5ef   :  { %4884 = dma.done.wait [#allocation5], 128  }
 0x5f0   :  { %4885 = vsyncadd [#allocation5], 4294967168 }
 0x5f1   :  { %3797 = vsyncpa [#allocation4], 1 }
 0x5f2   :  { %3798 = vsyncpa [#allocation7], 1 }
 0x5f3   :  { %3799 = vsyncpa [#allocation10], 1 }
 0x5f4   :  { %3800 = vsyncpa [#allocation5], 1 }

</bundles_post_ra>
